<compile_context>
chip_gen: v6e
topology: v6e:2x2x1
jax: 0.10.0
libtpu: 0.0.40
codegen_flags: <defaults>
</compile_context>

<pallas_src>
import jax
import jax.numpy as jnp
from jax.experimental import pallas as pl
from jax.experimental.pallas import tpu as pltpu


def _vq_kernel(n2e_ref, et_ref, e2_ref, x_ref, q_ref, idx_ref):
    # n2e_ref: (K, D)  -2 * codebook (distance matmul operand)
    # et_ref:  (D, K)  codebook transposed (gather matmul operand)
    # e2_ref:  (K, 1)  ||e||^2
    # x_ref:   (1, D, TL) input block in native (B, D, L) layout
    # q_ref:   (1, D, TL) quantized output block
    # idx_ref: (1, 1, TL) nearest-code indices (lane-dense)
    x = x_ref[0].astype(jnp.float32)                               # (D, TL)
    n2e = n2e_ref[...]                                             # (K, D)
    et = et_ref[...]                                               # (D, K)
    e2 = e2_ref[...]                                               # (K, 1)

    # Squared-distance surrogate (per-column ||x||^2 dropped; argmin unchanged).
    dist2 = e2 + jnp.dot(n2e, x, preferred_element_type=jnp.float32)  # (K, TL)

    # argmin over the K (sublane) axis with first-match tie-breaking.
    k, tl = dist2.shape
    iota = jax.lax.broadcasted_iota(jnp.int32, (k, tl), 0)         # (K, TL)
    min_d = jnp.min(dist2, axis=0, keepdims=True)                  # (1, TL)
    cand = jnp.where(dist2 == min_d, iota, jnp.int32(k))
    idx2d = jnp.min(cand, axis=0, keepdims=True)                   # (1, TL) int32
    idx_ref[0] = idx2d

    # Gather selected codes via one-hot matmul: (D, K) @ (K, TL) -> (D, TL).
    onehot = (iota == idx2d).astype(jnp.float32)                   # (K, TL)
    q = jnp.dot(et, onehot, preferred_element_type=jnp.float32)    # (D, TL) MXU
    q_ref[0] = q.astype(q_ref.dtype)


def vq_forward(x, embeddings, *, tile_l=2048):
    """x: (B, D, L) float, embeddings: (K, D) float -> (quantized, indices).

    quantized: (B, D, L) same dtype as x; indices: (B, L) int32.
    """
    B, D, L = x.shape
    K, D2 = embeddings.shape
    assert D == D2

    # Lane-aligned tile along L; never larger than the (padded) sequence.
    l_aligned = ((L + 127) // 128) * 128
    tile_l = max(128, min(((tile_l + 127) // 128) * 128, l_aligned))
    Lp = ((L + tile_l - 1) // tile_l) * tile_l
    if Lp != L:
        x = jnp.pad(x, ((0, 0), (0, 0), (0, Lp - L)))

    emb_f32 = embeddings.astype(jnp.float32)
    neg2e = -2.0 * emb_f32                                         # (K, D)
    emb_t = emb_f32.T                                              # (D, K)
    e2 = jnp.sum(emb_f32 * emb_f32, axis=-1, keepdims=True)        # (K, 1)

    grid = (B, Lp // tile_l)

    q_pad, idx_pad = pl.pallas_call(
        _vq_kernel,
        out_shape=(
            jax.ShapeDtypeStruct((B, D, Lp), x.dtype),
            jax.ShapeDtypeStruct((B, 1, Lp), jnp.int32),
        ),
        grid_spec=pltpu.PrefetchScalarGridSpec(
            num_scalar_prefetch=0,
            grid=grid,
            in_specs=[
                pl.BlockSpec((K, D), lambda b, l: (0, 0)),         # -2*codebook
                pl.BlockSpec((D, K), lambda b, l: (0, 0)),         # codebook^T
                pl.BlockSpec((K, 1), lambda b, l: (0, 0)),         # ||e||^2
                pl.BlockSpec((1, D, tile_l), lambda b, l: (b, 0, l)),
            ],
            out_specs=(
                pl.BlockSpec((1, D, tile_l), lambda b, l: (b, 0, l)),
                pl.BlockSpec((1, 1, tile_l), lambda b, l: (b, 0, l)),
            ),
        ),
        compiler_params=pltpu.CompilerParams(
            dimension_semantics=("parallel", "parallel"),
        ),
    )(neg2e, emb_t, e2, x)

    quantized = q_pad[:, :, :L]                                    # (B, D, L)
    indices = idx_pad[:, 0, :L]                                    # (B, L) int32
    return quantized, indices


def _reference(x, embeddings):
    # Pure-JAX reference mirroring the PyTorch forward.
    B, D, L = x.shape
    xf = jnp.transpose(x, (0, 2, 1)).reshape(-1, D)
    d2 = (jnp.sum(xf * xf, axis=-1, keepdims=True)
          - 2.0 * xf @ embeddings.T
          + jnp.sum(embeddings * embeddings, axis=-1)[None, :])
    idx = jnp.argmin(d2, axis=-1)
    q = embeddings[idx].reshape(B, L, D).transpose(0, 2, 1)
    return q, idx.reshape(B, L).astype(jnp.int32)


if __name__ == "__main__":
    # Module config: num_embeddings=128, embedding_dim=16; input x: (B, D, L).
    num_embeddings, embedding_dim = 128, 16
    B, L = 2, 1024

    key = jax.random.PRNGKey(0)
    k_emb, k_x = jax.random.split(key)
    # nn.Embedding weight initialized uniform_(-1, 1), deterministic here.
    embeddings = jax.random.uniform(
        k_emb, (num_embeddings, embedding_dim),
        minval=-1.0, maxval=1.0, dtype=jnp.float32)
    x = jax.random.normal(k_x, (B, embedding_dim, L), dtype=jnp.float32)

    quantized, indices = vq_forward(x, embeddings, tile_l=512)
    jax.block_until_ready((quantized, indices))

    q_ref, idx_ref = _reference(x, embeddings)
    assert quantized.shape == (B, embedding_dim, L) and quantized.dtype == jnp.float32
    assert indices.shape == (B, L) and indices.dtype == jnp.int32
    assert bool(jnp.all(indices == idx_ref))
    assert bool(jnp.allclose(quantized, q_ref, atol=1e-5, rtol=1e-5))

    print("KERNEL_OK")
</pallas_src>

<mosaic_0001>
module attributes {stable_mosaic.version = 11 : i64} {
  func.func @_vq_kernel(%arg0: i32, %arg1: i32, %arg2: memref<128x16xf32, #tpu.memory_space<vmem>>, %arg3: memref<16x128xf32, #tpu.memory_space<vmem>>, %arg4: memref<128x1xf32, #tpu.memory_space<vmem>>, %arg5: memref<1x16x512xf32, #tpu.memory_space<vmem>>, %arg6: memref<1x16x512xf32, #tpu.memory_space<vmem>>, %arg7: memref<1x1x512xi32, #tpu.memory_space<vmem>>) attributes {dimension_semantics = [#tpu.dimension_semantics<parallel>, #tpu.dimension_semantics<parallel>], iteration_bounds = array<i64: 2, 2>, scalar_prefetch = 0 : i64, scratch_operands = 0 : i64, tpu.core_type = #tpu.core_type<tc>, window_params = [{pipeline_mode = #tpu.pipeline_mode<synchronous>, transform_indices = @transform_0, window_bounds = array<i64: 128, 16>}, {pipeline_mode = #tpu.pipeline_mode<synchronous>, transform_indices = @transform_1, window_bounds = array<i64: 16, 128>}, {pipeline_mode = #tpu.pipeline_mode<synchronous>, transform_indices = @transform_2, window_bounds = array<i64: 128, 1>}, {transform_indices = @transform_3, window_bounds = array<i64: 1, 16, 512>}, {transform_indices = @transform_4, window_bounds = array<i64: 1, 16, 512>}, {transform_indices = @transform_5, window_bounds = array<i64: 1, 1, 512>}]} {
    %c0 = arith.constant 0 : index
    %c0_0 = arith.constant 0 : index
    %c0_1 = arith.constant 0 : index
    %0 = vector.load %arg5[%c0, %c0_0, %c0_1] : memref<1x16x512xf32, #tpu.memory_space<vmem>>, vector<1x16x512xf32>
    %1 = vector.shape_cast %0 : vector<1x16x512xf32> to vector<16x512xf32>
    %c0_2 = arith.constant 0 : index
    %c0_3 = arith.constant 0 : index
    %2 = vector.load %arg2[%c0_2, %c0_3] : memref<128x16xf32, #tpu.memory_space<vmem>>, vector<128x16xf32>
    %c0_4 = arith.constant 0 : index
    %c0_5 = arith.constant 0 : index
    %3 = vector.load %arg3[%c0_4, %c0_5] : memref<16x128xf32, #tpu.memory_space<vmem>>, vector<16x128xf32>
    %c0_6 = arith.constant 0 : index
    %c0_7 = arith.constant 0 : index
    %4 = vector.load %arg4[%c0_6, %c0_7] : memref<128x1xf32, #tpu.memory_space<vmem>>, vector<128x1xf32>
    %cst = arith.constant dense<0.000000e+00> : vector<128x512xf32>
    %5 = tpu.matmul %2, %1, %cst {dimension_numbers = #tpu.dot_dimension_numbers<[1], [0], [0], [1], [0, 0, 1, 1], [], []>} : vector<128x16xf32>, vector<16x512xf32>, vector<128x512xf32> -> vector<128x512xf32>
    %6 = vector.broadcast %4 : vector<128x1xf32> to vector<128x512xf32>
    %7 = arith.addf %6, %5 : vector<128x512xf32>
    %8 = tpu.iota {dimensions = array<i32: 0>} : vector<128x512xi32>
    %cst_8 = arith.constant dense<0x7F800000> : vector<512xf32>
    %9 = vector.multi_reduction <minimumf>, %7, %cst_8 [0] : vector<128x512xf32> to vector<512xf32>
    %10 = vector.shape_cast %9 : vector<512xf32> to vector<1x512xf32>
    %11 = vector.broadcast %10 : vector<1x512xf32> to vector<128x512xf32>
    %12 = arith.cmpf oeq, %7, %11 : vector<128x512xf32>
    %c128_i32 = arith.constant 128 : i32
    %13 = vector.broadcast %c128_i32 : i32 to vector<128x512xi32>
    %14 = arith.select %12, %8, %13 : vector<128x512xi1>, vector<128x512xi32>
    %cst_9 = arith.constant dense<2147483647> : vector<512xi32>
    %15 = vector.multi_reduction <minsi>, %14, %cst_9 [0] : vector<128x512xi32> to vector<512xi32>
    %16 = vector.shape_cast %15 : vector<512xi32> to vector<1x512xi32>
    %c0_10 = arith.constant 0 : index
    %c0_11 = arith.constant 0 : index
    %c0_12 = arith.constant 0 : index
    %17 = vector.load %arg7[%c0_10, %c0_11, %c0_12] : memref<1x1x512xi32, #tpu.memory_space<vmem>>, vector<1x1x512xi32>
    %18 = vector.shape_cast %17 : vector<1x1x512xi32> to vector<1x512xi32>
    %19 = vector.shape_cast %16 : vector<1x512xi32> to vector<1x1x512xi32>
    tpu.vector_store %arg7[%c0_10, %c0_11, %c0_12], %19 {strides = array<i32>} : memref<1x1x512xi32, #tpu.memory_space<vmem>>, vector<1x1x512xi32>,
    %20 = vector.broadcast %16 : vector<1x512xi32> to vector<128x512xi32>
    %21 = arith.cmpi eq, %8, %20 : vector<128x512xi32>
    %22 = arith.extui %21 : vector<128x512xi1> to vector<128x512xi32>
    %23 = arith.sitofp %22 : vector<128x512xi32> to vector<128x512xf32>
    %cst_13 = arith.constant dense<0.000000e+00> : vector<16x512xf32>
    %24 = tpu.matmul %3, %23, %cst_13 {dimension_numbers = #tpu.dot_dimension_numbers<[1], [0], [0], [1], [0, 0, 1, 1], [], []>} : vector<16x128xf32>, vector<128x512xf32>, vector<16x512xf32> -> vector<16x512xf32>
    %c0_14 = arith.constant 0 : index
    %c0_15 = arith.constant 0 : index
    %c0_16 = arith.constant 0 : index
    %25 = vector.load %arg6[%c0_14, %c0_15, %c0_16] : memref<1x16x512xf32, #tpu.memory_space<vmem>>, vector<1x16x512xf32>
    %26 = vector.shape_cast %25 : vector<1x16x512xf32> to vector<16x512xf32>
    %27 = vector.shape_cast %24 : vector<16x512xf32> to vector<1x16x512xf32>
    tpu.vector_store %arg6[%c0_14, %c0_15, %c0_16], %27 {strides = array<i32>} : memref<1x16x512xf32, #tpu.memory_space<vmem>>, vector<1x16x512xf32>,
    return
  }
  func.func @transform_0(%arg0: i32, %arg1: i32) -> (i32, i32) {
    %c0_i32 = arith.constant 0 : i32
    %c0_i32_0 = arith.constant 0 : i32
    %c0_i32_1 = arith.constant 0 : i32
    return %c0_i32, %c0_i32_0 : i32, i32
  }
  func.func @transform_1(%arg0: i32, %arg1: i32) -> (i32, i32) {
    %c0_i32 = arith.constant 0 : i32
    %c0_i32_0 = arith.constant 0 : i32
    %c0_i32_1 = arith.constant 0 : i32
    return %c0_i32, %c0_i32_0 : i32, i32
  }
  func.func @transform_2(%arg0: i32, %arg1: i32) -> (i32, i32) {
    %c0_i32 = arith.constant 0 : i32
    %c0_i32_0 = arith.constant 0 : i32
    %c0_i32_1 = arith.constant 0 : i32
    return %c0_i32, %c0_i32_0 : i32, i32
  }
  func.func @transform_3(%arg0: i32, %arg1: i32) -> (i32, i32, i32) {
    %c0_i32 = arith.constant 0 : i32
    %c0_i32_0 = arith.constant 0 : i32
    return %arg0, %c0_i32, %arg1 : i32, i32, i32
  }
  func.func @transform_4(%arg0: i32, %arg1: i32) -> (i32, i32, i32) {
    %c0_i32 = arith.constant 0 : i32
    %c0_i32_0 = arith.constant 0 : i32
    return %arg0, %c0_i32, %arg1 : i32, i32, i32
  }
  func.func @transform_5(%arg0: i32, %arg1: i32) -> (i32, i32, i32) {
    %c0_i32 = arith.constant 0 : i32
    %c0_i32_0 = arith.constant 0 : i32
    return %arg0, %c0_i32, %arg1 : i32, i32, i32
  }
}

</mosaic_0001>

<bundles_post_ra>
// kernel: tpu_custom_call.1
= control target key start
LH: loop header
LB: loop body
LE: loop exit
PB: predicated region body
PF: predicated region fallthrough
CT: control target
= control target key end

     0   :  { %s3417_s0 = inlined_call_operand.vmem [shape: f32[128,16], index: 0, kind: input, shape index: {}]   ;;  %s3418_s1 = inlined_call_operand.vmem [shape: f32[16,128], index: 1, kind: input, shape index: {}]   ;;  %s3419_s2 = inlined_call_operand.vmem [shape: f32[128,1], index: 2, kind: input, shape index: {}]   ;;  %s3420_s3 = inlined_call_operand.vmem [shape: f32[2,16,1024], index: 3, kind: input, shape index: {}]   ;;  %s3421_s4 = inlined_call_operand.hbm [shape: f32[2,16,1024], index: 4, kind: output, shape index: {0}]   ;;  %s3422_s5 = inlined_call_operand.hbm [shape: s32[2,1,1024], index: 5, kind: output, shape index: {1}]  }
   0x1   :  { %3451 = sst [smem:[#allocation33_spill]] %s3417_s0 }
   0x2   :  { %3452 = sst [smem:[#allocation34_spill]] %s3418_s1 }
   0x3   :  { %3453 = sst [smem:[#allocation35_spill]] %s3419_s2 }
   0x4   :  { %11 = vsyncpa [#allocation4], 0 }
   0x5   :  { %13 = vsyncpa [#allocation4 + $0x1], 0 }
   0x6   :  { %14 = vsyncpa [#allocation6], 0 }
   0x7   :  { %16 = vsyncpa [#allocation6 + $0x1], 0  ;;  %s2203_s18 = smov 0   ;;  %s2205_s19 = smov 0  }
   0x8   :  { %s2207_s20 = smov 0   ;;  %s2209_s21 = smov 0  }
   0x9   :  { %s2211_s22 = smov 0   ;;  %s2213_s23 = smov 0  }
   0xa   :  { %s2215_s24 = smov 0   ;;  %s2217_s25 = smov 0  }
   0xb LB: > { %s1773_s26 = sadd.s32 4294967295, %s2162_s25   ;;  %s1774_s27 = sadd.s32 4294967294, %s2162_s25   ;;  %s2162_s25 = sphi %s2217_s25, %s22_s25   ;;  %s2158_s24 = sphi %s2215_s24, %s3518_s24   ;;  %s2154_s23 = sphi %s2213_s23, %s3517_s23   ;;  %s2150_s22 = sphi %s2211_s22, %s3516_s22   ;;  %s2146_s21 = sphi %s2209_s21, %s3515_s21   ;;  %s2142_s20 = sphi %s2207_s20, %s3514_s20   ;;  %s2138_s19 = sphi %s2205_s19, %s3513_s19   ;;  %s2134_s18 = sphi %s2203_s18, %s3512_s18  }
   0xc   : > { %s31_s28 = sadd.s32 1, %s2154_s23  ;;  %s34_s29 = sadd.s32 1, %s2158_s24 }
   0xd   : > { %p32_p0 = scmp.ge.s32.totalorder %s31_s28, 2  ;;  %p113_p1 = scmp.ne.s32.totalorder %s2142_s20, %s2138_s19 }
   0xe   : > { %p114_p2 = scmp.eq.s32.totalorder %s2162_s25, 0  ;;  %p145_p5 = scmp.eq.s32.totalorder %s1773_s26, 3 }
   0xf   : > { %s3520_s28 = smov (%p32_p0, %s31_s28), 0  ;;  %s3522_s29 = smov (!%p32_p0, %s34_s29), %s2158_s24 }
  0x10   : > { %s102_s30 = ssub.s32 %s2154_s23, %s3520_s28  ;;  %p2255_p3 = por %p114_p2, %p113_p1 }
  0x11   : > { %p36_p4 = scmp.ge.s32.totalorder %s3522_s29, 2  ;;  %p150_p6 = scmp.ne.s32.totalorder %s2138_s19, %s2134_s18 }
  0x12   : > { %p151_p7 = scmp.eq.s32.totalorder %s1774_s27, 3  ;;  %p2263_p8 = por %p145_p5, %p113_p1 }
  0x13   : > { %s3524_s29 = smov (%p36_p4, %s3522_s29), 0  ;;  %s106_s11 = sadd.s32 1, %s2142_s20 }
  0x14   : > { %p2267_p9 = por %p151_p7, %p150_p6  ;;  %s101_s9 = ssub.s32 %s2158_s24, %s3524_s29 }
  0x15   : > { %s103_s10 = sor.u32 %s102_s30, %s101_s9  ;;  %p1776_p11 = scmp.ge.s32.totalorder %s2162_s25, 4 }
  0x16   : > { %p104_p10 = scmp.eq.s32.totalorder %s103_s10, 0 }
  0x17   : > { %204 = sbr.rel (%p1776_p11) target bundleno = 39 (0x27), region = 28 }
  0x18   : > { %s2275_s12 = scalar_select %p104_p10, %s2142_s20, %s106_s11  }
  0x1c   : > { %207 = sbr.rel (!%p2255_p3) target bundleno = 39 (0x27), region = 32  ;;  %s209_s13 = sand.u32 (%p2255_p3), 1, %s2142_s20  }
  0x1d   : > { %s1778_s14 = sshll.u32 (%p2255_p3), %s2154_s23, 2  ;;  %s1777_s15 = sshll.u32 (%p2255_p3), %s209_s13, 6 }
  0x1e   : > { %s1779_s16 = sshll.u32 (%p2255_p3), %s2158_s24, 4  ;;  %s211_s10 = scalar_lea.vmem (%p2255_p3), [#allocation2], %s1777_s15 }
  0x1f   : > { %s214_s17 = sadd.s32 (%p2255_p3), %s1779_s16, %s1778_s14 }
  0x20   : > { %s1780_s26 = sshll.u32 (%p2255_p3), %s214_s17, 3 }
  0x21   : > { %s216_s9 = scalar_lea.vmem %s3420_s3, %s1780_s26 }
  0x22   : > { %v229_v0 = vld [vmem:[%s216_s9] sm:$0xff]  ;;  %v231_v1 = vld [vmem:[%s216_s9 + $0x8] sm:$0xff]  ;;  %v233_v2 = vld [vmem:[%s216_s9 + $0x10] sm:$0xff] }
  0x23   : > { %230 = vst [vmem:[%s211_s10] sm:$0xff] %v229_v0  ;;  %232 = vst [vmem:[%s211_s10 + $0x8] sm:$0xff] %v231_v1  ;;  %v235_v3 = vld [vmem:[%s216_s9 + $0x18] sm:$0xff]  ;;  %v237_v4 = vld [vmem:[%s216_s9 + $0x40] sm:$0xff] }
  0x24   : > { %234 = vst [vmem:[%s211_s10 + $0x10] sm:$0xff] %v233_v2  ;;  %v239_v5 = vld [vmem:[%s216_s9 + $0x48] sm:$0xff]  ;;  %236 = vst [vmem:[%s211_s10 + $0x18] sm:$0xff] %v235_v3  ;;  %v241_v6 = vld [vmem:[%s216_s9 + $0x50] sm:$0xff] }
  0x25   : > { %238 = vst [vmem:[%s211_s10 + $0x20] sm:$0xff] %v237_v4  ;;  %240 = vst [vmem:[%s211_s10 + $0x28] sm:$0xff] %v239_v5  ;;  %v243_v7 = vld [vmem:[%s216_s9 + $0x58] sm:$0xff] }
  0x26   : > { %242 = vst [vmem:[%s211_s10 + $0x30] sm:$0xff] %v241_v6  ;;  %244 = vst [vmem:[%s211_s10 + $0x38] sm:$0xff] %v243_v7 }
  0x27 PF: > { %p1781_p12 = scmp.ge.s32.totalorder %s2162_s25, 1  ;;  %p249_p13 = scmp.lt.s32.totalorder %s2162_s25, 5 }
  0x29   : > { %p250_p0 = pnand %p1781_p12, %p249_p13 }
  0x2b   : > { %253 = sbr.rel (%p250_p0) target bundleno = 663 (0x297), region = 55 }
  0x30   : > { %s2289_s6 = sand.u32 1, %s2138_s19   ;;  %v3423_v8 = vmov 0.0   ;;  %v2165_v9 = vmov 0   ;;  %s3457_s0 = sld [smem:[#allocation33_spill]]  ;;  %vm333_vm0 = vcmask 130048  }
  0x31   : > { %s3450_s11 = sshll.u32 %s2289_s6, 6  ;;  %446 = vmatprep.mubr.f32.mxu0 %v3423_v8  ;;  %607 = vmatprep.mubr.f32.mxu1 %v3423_v8  ;;  %s3458_s2 = sld [smem:[#allocation35_spill]] }
  0x32   : > { %2038 = vset.pattern.permute.xlu0 %v2165_v9  ;;  %2039 = vset.pattern.permute.xlu1 %v2165_v9  ;;  %s258_s13 = scalar_lea.vmem [#allocation2], %s3450_s11  ;;  %s1784_s26 = sshll.u32 %s2289_s6, 2 }
  0x33   : > { %v296_v10 = vld [vmem:[%s258_s13 + $0x28] sm:$0xff]  ;;  %v298_v11 = vld [vmem:[%s258_s13 + $0x38] sm:$0xff]  ;;  %v295_v12 = vld [vmem:[%s258_s13 + $0x20] sm:$0xff]  ;;  %s3509_s1 = sld [smem:[#allocation34_spill]]  ;;  %s3264_s9 = scalar_lea.vmem [#allocation5], %s1784_s26 }
  0x34   : > { %410 = vmatprep.subr.mxu0 %v296_v10  ;;  %571 = vmatprep.subr.mxu1 %v298_v11  ;;  %v297_v13 = vld [vmem:[%s258_s13 + $0x30] sm:$0xff]  ;;  %v292_v14 = vld [vmem:[%s258_s13 + $0x8] sm:$0xff]  ;;  %v294_v15 = vld [vmem:[%s258_s13 + $0x18] sm:$0xff]  ;;  %s1947_s14 = sshll.u32 %s2146_s21, 2  ;;  %s1951_s15 = sshll.u32 %s2150_s22, 3 }
  0x35   : > { %411 = vmatpush1.msra.mxu0 %v295_v12  ;;  %572 = vmatpush1.msra.mxu1 %v297_v13  ;;  %v291_v16 = vld [vmem:[%s258_s13] sm:$0xff]  ;;  %v293_v17 = vld [vmem:[%s258_s13 + $0x10] sm:$0xff]  ;;  %s1652_s16 = sadd.s32 %s1951_s15, %s1947_s14  ;;  %s1656_s17 = sshll.u32 %s3264_s9, 4  ;;  %s1657_s17 = int_to_ptr.vmem [resolvable:$true] %s1656_s17 }
  0x36   : > { %v299_v18 = vld [vmem:[%s3457_s0] sm:$0xff]  ;;  %412 = vmatprep.subr.mxu0 %v292_v14  ;;  %573 = vmatprep.subr.mxu1 %v294_v15  ;;  %v300_v21 = vld [vmem:[%s3457_s0 + $0x8] sm:$0xff]  ;;  %v301_v24 = vld [vmem:[%s3457_s0 + $0x10] sm:$0xff]  ;;  %s1952_s26 = sshll.u32 %s1652_s16, 4  ;;  %s1622_s13 = scalar_lea.sflag [#allocation6], %s2289_s6 }
  0x37   : > { %413 = vmatpush1.msra.mxu0 %v291_v16  ;;  %574 = vmatpush1.msra.mxu1 %v293_v17  ;;  %v317_v19 = vld [vmem:[%s3458_s2] sm:$0xff]  ;;  %v319_v20 = vld [vmem:[%s3458_s2 + $0x10] sm:$0xff]  ;;  %v318_v22 = vld [vmem:[%s3458_s2 + $0x8] sm:$0xff]  ;;  %s1654_s10 = scalar_lea.hbm %s3422_s5, %s1952_s26  ;;  %s2040_s11 = scalar_lea.vmem %s1657_s17, 64 }
  0x38   : > { %1785 = vmatmul.mubr.msk.f32.vlgmr.msra.gmra.mxu0 %vm333_vm0, %v299_v18  ;;  %1801 = vmatmul.mubr.msk.f32.vlgmr.msra.gmra.mxu1 %vm333_vm0, %v299_v18  ;;  %v320_v23 = vld [vmem:[%s3458_s2 + $0x18] sm:$0xff]  ;;  %v321_v25 = vld [vmem:[%s3458_s2 + $0x20] sm:$0xff]  ;;  %v322_v26 = vld [vmem:[%s3458_s2 + $0x28] sm:$0xff]  ;;  %p2041_p1 = scmp.ne.s32.totalorder %s1657_s17, %s2040_s11 }
  0x39   : > { %452 = vmatprep.mubr.f32.mxu0 %v3423_v8  ;;  %613 = vmatprep.mubr.f32.mxu1 %v3423_v8  ;;  %v302_v27 = vld [vmem:[%s3457_s0 + $0x18] sm:$0xff]  ;;  %v323_v28 = vld [vmem:[%s3458_s2 + $0x30] sm:$0xff]  ;;  %v303_v30 = vld [vmem:[%s3457_s0 + $0x20] sm:$0xff] }
  0x3a   : > { %706 = vperm.xlu0 %2038, %v317_v19   ;;  %716 = vperm.xlu1 %2039, %v319_v20   ;;  %v324_v29 = vld [vmem:[%s3458_s2 + $0x38] sm:$0xff]  ;;  %v325_v31 = vld [vmem:[%s3458_s2 + $0x40] sm:$0xff]  ;;  %v326_v32 = vld [vmem:[%s3458_s2 + $0x48] sm:$0xff]  ;;  %p2042_p2 = pnand %p2041_p1, %p2263_p8 }
  0x3b   : > { %v304_v33 = vld [vmem:[%s3457_s0 + $0x28] sm:$0xff]  ;;  %v327_v34 = vld [vmem:[%s3458_s2 + $0x50] sm:$0xff]  ;;  %v328_v35 = vld [vmem:[%s3458_s2 + $0x58] sm:$0xff] }
  0x3c   : > { %1786 = vmatmul.mubr.msk.f32.gmra.mxu0 %vm333_vm0, %v300_v21  ;;  %1802 = vmatmul.mubr.msk.f32.gmra.mxu1 %vm333_vm0, %v300_v21  ;;  %v305_v36 = vld [vmem:[%s3457_s0 + $0x30] sm:$0xff]  ;;  %v329_v37 = vld [vmem:[%s3458_s2 + $0x60] sm:$0xff]  ;;  %v330_v38 = vld [vmem:[%s3458_s2 + $0x68] sm:$0xff]  ;;  %p2043_p3 = pneg %p2042_p2 }
  0x3d   : > { %458 = vmatprep.mubr.f32.mxu0 %v3423_v8  ;;  %619 = vmatprep.mubr.f32.mxu1 %v3423_v8  ;;  %v306_v39 = vld [vmem:[%s3457_s0 + $0x38] sm:$0xff]  ;;  %v331_v40 = vld [vmem:[%s3458_s2 + $0x70] sm:$0xff]  ;;  %v307_v42 = vld [vmem:[%s3457_s0 + $0x40] sm:$0xff] }
  0x3e   : > { %711 = vperm.xlu0 %2038, %v318_v22   ;;  %721 = vperm.xlu1 %2039, %v320_v23   ;;  %v332_v41 = vld [vmem:[%s3458_s2 + $0x78] sm:$0xff]  ;;  %v308_v43 = vld [vmem:[%s3457_s0 + $0x48] sm:$0xff]  ;;  %v309_v44 = vld [vmem:[%s3457_s0 + $0x50] sm:$0xff] }
  0x3f   : > { %v310_v45 = vld [vmem:[%s3457_s0 + $0x58] sm:$0xff]  ;;  %v311_v46 = vld [vmem:[%s3457_s0 + $0x60] sm:$0xff]  ;;  %v312_v47 = vld [vmem:[%s3457_s0 + $0x68] sm:$0xff] }
  0x40   : > { %1787 = vmatmul.mubr.msk.f32.gmra.mxu0 %vm333_vm0, %v301_v24  ;;  %1803 = vmatmul.mubr.msk.f32.gmra.mxu1 %vm333_vm0, %v301_v24  ;;  %v313_v48 = vld [vmem:[%s3457_s0 + $0x70] sm:$0xff]  ;;  %v314_v49 = vld [vmem:[%s3457_s0 + $0x78] sm:$0xff]  ;;  %s2168_s0 = smov [#allocation5]  }
  0x41   : > { %464 = vmatprep.mubr.f32.mxu0 %v3423_v8  ;;  %625 = vmatprep.mubr.f32.mxu1 %v3423_v8 }
  0x42   : > { %726 = vperm.xlu0 %2038, %v321_v25   ;;  %731 = vperm.xlu1 %2039, %v322_v26  }
  0x44   : > { %1788 = vmatmul.mubr.msk.f32.gmra.mxu0 %vm333_vm0, %v302_v27  ;;  %1804 = vmatmul.mubr.msk.f32.gmra.mxu1 %vm333_vm0, %v302_v27 }
  0x45   : > { %470 = vmatprep.mubr.f32.mxu0 %v3423_v8  ;;  %631 = vmatprep.mubr.f32.mxu1 %v3423_v8 }
  0x46   : > { %736 = vperm.xlu0 %2038, %v323_v28   ;;  %741 = vperm.xlu1 %2039, %v324_v29  }
  0x48   : > { %1789 = vmatmul.mubr.msk.f32.gmra.mxu0 %vm333_vm0, %v303_v30  ;;  %1805 = vmatmul.mubr.msk.f32.gmra.mxu1 %vm333_vm0, %v303_v30 }
  0x49   : > { %476 = vmatprep.mubr.f32.mxu0 %v3423_v8  ;;  %637 = vmatprep.mubr.f32.mxu1 %v3423_v8 }
  0x4a   : > { %746 = vperm.xlu0 %2038, %v325_v31   ;;  %751 = vperm.xlu1 %2039, %v326_v32  }
  0x4c   : > { %1790 = vmatmul.mubr.msk.f32.gmra.mxu0 %vm333_vm0, %v304_v33  ;;  %1806 = vmatmul.mubr.msk.f32.gmra.mxu1 %vm333_vm0, %v304_v33 }
  0x4d   : > { %482 = vmatprep.mubr.f32.mxu0 %v3423_v8  ;;  %643 = vmatprep.mubr.f32.mxu1 %v3423_v8 }
  0x4e   : > { %756 = vperm.xlu0 %2038, %v327_v34   ;;  %761 = vperm.xlu1 %2039, %v328_v35  }
  0x50   : > { %1791 = vmatmul.mubr.msk.f32.gmra.mxu0 %vm333_vm0, %v305_v36  ;;  %1807 = vmatmul.mubr.msk.f32.gmra.mxu1 %vm333_vm0, %v305_v36 }
  0x51   : > { %488 = vmatprep.mubr.f32.mxu0 %v3423_v8  ;;  %649 = vmatprep.mubr.f32.mxu1 %v3423_v8 }
  0x52   : > { %766 = vperm.xlu0 %2038, %v329_v37   ;;  %771 = vperm.xlu1 %2039, %v330_v38  }
  0x54   : > { %1792 = vmatmul.mubr.msk.f32.gmra.mxu0 %vm333_vm0, %v306_v39  ;;  %1808 = vmatmul.mubr.msk.f32.gmra.mxu1 %vm333_vm0, %v306_v39 }
  0x55   : > { %494 = vmatprep.mubr.f32.mxu0 %v3423_v8  ;;  %655 = vmatprep.mubr.f32.mxu1 %v3423_v8 }
  0x56   : > { %776 = vperm.xlu0 %2038, %v331_v40   ;;  %781 = vperm.xlu1 %2039, %v332_v41  }
  0x58   : > { %1793 = vmatmul.mubr.msk.f32.gmra.mxu0 %vm333_vm0, %v307_v42  ;;  %1809 = vmatmul.mubr.msk.f32.gmra.mxu1 %vm333_vm0, %v307_v42 }
  0x59   : > { %500 = vmatprep.mubr.f32.mxu0 %v3423_v8  ;;  %661 = vmatprep.mubr.f32.mxu1 %v3423_v8 }
  0x5c   : > { %1794 = vmatmul.mubr.msk.f32.gmra.mxu0 %vm333_vm0, %v308_v43  ;;  %1810 = vmatmul.mubr.msk.f32.gmra.mxu1 %vm333_vm0, %v308_v43 }
  0x5d   : > { %506 = vmatprep.mubr.f32.mxu0 %v3423_v8  ;;  %667 = vmatprep.mubr.f32.mxu1 %v3423_v8 }
  0x60   : > { %1795 = vmatmul.mubr.msk.f32.gmra.mxu0 %vm333_vm0, %v309_v44  ;;  %1811 = vmatmul.mubr.msk.f32.gmra.mxu1 %vm333_vm0, %v309_v44 }
  0x61   : > { %512 = vmatprep.mubr.f32.mxu0 %v3423_v8  ;;  %673 = vmatprep.mubr.f32.mxu1 %v3423_v8 }
  0x64   : > { %1796 = vmatmul.mubr.msk.f32.gmra.mxu0 %vm333_vm0, %v310_v45  ;;  %1812 = vmatmul.mubr.msk.f32.gmra.mxu1 %vm333_vm0, %v310_v45 }
  0x65   : > { %518 = vmatprep.mubr.f32.mxu0 %v3423_v8  ;;  %679 = vmatprep.mubr.f32.mxu1 %v3423_v8 }
  0x68   : > { %1797 = vmatmul.mubr.msk.f32.gmra.mxu0 %vm333_vm0, %v311_v46  ;;  %1813 = vmatmul.mubr.msk.f32.gmra.mxu1 %vm333_vm0, %v311_v46 }
  0x69   : > { %524 = vmatprep.mubr.f32.mxu0 %v3423_v8  ;;  %685 = vmatprep.mubr.f32.mxu1 %v3423_v8 }
  0x6c   : > { %1798 = vmatmul.mubr.msk.f32.gmra.mxu0 %vm333_vm0, %v312_v47  ;;  %1814 = vmatmul.mubr.msk.f32.gmra.mxu1 %vm333_vm0, %v312_v47 }
  0x6d   : > { %530 = vmatprep.mubr.f32.mxu0 %v3423_v8  ;;  %691 = vmatprep.mubr.f32.mxu1 %v3423_v8 }
  0x70   : > { %1799 = vmatmul.mubr.msk.f32.gmra.mxu0 %vm333_vm0, %v313_v48  ;;  %1815 = vmatmul.mubr.msk.f32.gmra.mxu1 %vm333_vm0, %v313_v48 }
  0x71   : > { %536 = vmatprep.mubr.f32.mxu0 %v3423_v8  ;;  %697 = vmatprep.mubr.f32.mxu1 %v3423_v8 }
  0x74   : > { %1800 = vmatmul.mubr.msk.f32.gmra.mxu0 %vm333_vm0, %v314_v49  ;;  %1816 = vmatmul.mubr.msk.f32.gmra.mxu1 %vm333_vm0, %v314_v49 }
  0x75   : > { %1518 = vmatprep.mubr.f32.mxu0 %v3423_v8  ;;  %1595 = vmatprep.mubr.f32.mxu1 %v3423_v8 }
  0xb5   : > { %v2468_v2 = vpop.permute.xlu0 %706  ;;  %v2470_v5 = vpop.permute.xlu1 %716 }
  0xb9   : > { %v2476_v11 = vpop.permute.xlu0 %711  ;;  %v2482_v14 = vpop.permute.xlu1 %721 }
  0xbd   : > { %v2484_v17 = vpop.permute.xlu0 %726  ;;  %v2490_v22 = vpop.permute.xlu1 %731 }
  0xc1   : > { %v2502_v27 = vpop.permute.xlu0 %736  ;;  %v2530_v40 = vpop.permute.xlu1 %741 }
  0xc5   : > { %v2540_v47 = vpop.permute.xlu0 %746 }
  0xf8   : > { %v448_v50 = vpop.f32.mrf.mxu0  ;;  %v609_v51 = vpop.f32.mrf.mxu1 }
  0xf9   : > { %v2505_v30 = vadd.f32 %v2468_v2, %v448_v50  ;;  %v2508_v31 = vadd.f32 %v2468_v2, %v609_v51 }
  0xfa   : > { %v2456_v52 = vpop.f32.mrf.mxu0  ;;  %v2458_v53 = vpop.f32.mrf.mxu1 }
  0xfc   : > { %v454_v54 = vpop.f32.mrf.mxu0  ;;  %v615_v55 = vpop.f32.mrf.mxu1 }
  0xfd   : > { %v2497_v25 = vadd.f32 %v2476_v11, %v454_v54  ;;  %v2500_v26 = vadd.f32 %v2476_v11, %v615_v55 }
  0xfe   : > { %v456_v56 = vpop.f32.mrf.mxu0  ;;  %v2460_v57 = vpop.f32.mrf.mxu1 }
  0xff   : > { %v865_v36 = vmin.f32 %v2505_v30, %v2497_v25  ;;  %v907_v37 = vmin.f32 %v2508_v31, %v2500_v26  ;;  %v2543_v48 = vadd.f32 %v2476_v11, %v456_v56 }
 0x100   : > { %v460_v58 = vpop.f32.mrf.mxu0  ;;  %v621_v59 = vpop.f32.mrf.mxu1 }
 0x101   : > { %v2511_v32 = vadd.f32 %v2470_v5, %v460_v58  ;;  %v2514_v33 = vadd.f32 %v2470_v5, %v621_v59  ;;  %3462 = vst [vmem:[#allocation12_spill] sm:$0xff] %v2543_v48  ;;  %v2559_v59 = vadd.f32 %v2468_v2, %v2456_v52 }
 0x102   : > { %v462_v60 = vpop.f32.mrf.mxu0  ;;  %v2462_v61 = vpop.f32.mrf.mxu1 }
 0x103   : > { %3459 = vst [vmem:[#allocation9_spill] sm:$0xff] %v2514_v33  ;;  %v866_v43 = vmin.f32 %v865_v36, %v2511_v32  ;;  %v908_v44 = vmin.f32 %v907_v37, %v2514_v33  ;;  %3464 = vst [vmem:[#allocation14_spill] sm:$0xff] %v2559_v59  ;;  %v2562_v56 = vadd.f32 %v2470_v5, %v462_v60  ;;  %v2566_v36 = vpop.permute.xlu1 %751 }
 0x104   : > { %v466_v62 = vpop.f32.mrf.mxu0  ;;  %v627_v63 = vpop.f32.mrf.mxu1  ;;  %v886_v52 = vmin.f32 %v2559_v59, %v2543_v48 }
 0x105   : > { %v2525_v38 = vadd.f32 %v2482_v14, %v466_v62  ;;  %v2528_v39 = vadd.f32 %v2482_v14, %v627_v63  ;;  %3465 = vst [vmem:[#allocation15_spill] sm:$0xff] %v2562_v56 }
 0x106   : > { %v2464_v0 = vpop.f32.mrf.mxu0  ;;  %v2466_v1 = vpop.f32.mrf.mxu1  ;;  %v887_v8 = vmin.f32 %v886_v52, %v2562_v56 }
 0x107   : > { %3460 = vst [vmem:[#allocation10_spill] sm:$0xff] %v2528_v39  ;;  %v867_v51 = vmin.f32 %v866_v43, %v2525_v38  ;;  %v909_v54 = vmin.f32 %v908_v44, %v2528_v39  ;;  %v2578_v60 = vadd.f32 %v2482_v14, %v2464_v0 }
 0x108   : > { %v472_v3 = vpop.f32.mrf.mxu0  ;;  %v633_v4 = vpop.f32.mrf.mxu1 }
 0x109   : > { %v2535_v45 = vadd.f32 %v2484_v17, %v472_v3  ;;  %v2538_v46 = vadd.f32 %v2484_v17, %v633_v4  ;;  %3467 = vst [vmem:[#allocation17_spill] sm:$0xff] %v2578_v60 }
 0x10a   : > { %v2472_v6 = vpop.f32.mrf.mxu0  ;;  %v2474_v7 = vpop.f32.mrf.mxu1 }
 0x10b   : > { %3461 = vst [vmem:[#allocation11_spill] sm:$0xff] %v2538_v46  ;;  %v868_v3 = vmin.f32 %v867_v51, %v2535_v45  ;;  %v910_v4 = vmin.f32 %v909_v54, %v2538_v46  ;;  %v2597_v0 = vadd.f32 %v2484_v17, %v2472_v6  ;;  %v2614_v46 = vpop.permute.xlu1 %761 }
 0x10c   : > { %v478_v9 = vpop.f32.mrf.mxu0  ;;  %v639_v10 = vpop.f32.mrf.mxu1 }
 0x10d   : > { %v2552_v55 = vadd.f32 %v2490_v22, %v478_v9  ;;  %v2555_v58 = vadd.f32 %v2490_v22, %v639_v10  ;;  %3469 = vst [vmem:[#allocation19_spill] sm:$0xff] %v2597_v0 }
 0x10e   : > { %v2478_v12 = vpop.f32.mrf.mxu0  ;;  %v2480_v13 = vpop.f32.mrf.mxu1 }
 0x10f   : > { %3463 = vst [vmem:[#allocation13_spill] sm:$0xff] %v2555_v58  ;;  %v869_v44 = vmin.f32 %v868_v3, %v2552_v55  ;;  %v911_v51 = vmin.f32 %v910_v4, %v2555_v58  ;;  %v2610_v52 = vadd.f32 %v2490_v22, %v2478_v12 }
 0x110   : > { %v484_v15 = vpop.f32.mrf.mxu0  ;;  %v645_v16 = vpop.f32.mrf.mxu1 }
 0x111   : > { %v2569_v9 = vadd.f32 %v2502_v27, %v484_v15  ;;  %v2572_v10 = vadd.f32 %v2502_v27, %v645_v16  ;;  %v2586_v15 = vpop.permute.xlu0 %756  ;;  %3471 = vst [vmem:[#allocation21_spill] sm:$0xff] %v2610_v52 }
 0x112   : > { %v2486_v18 = vpop.f32.mrf.mxu0  ;;  %v2488_v19 = vpop.f32.mrf.mxu1 }
 0x113   : > { %3466 = vst [vmem:[#allocation16_spill] sm:$0xff] %v2572_v10  ;;  %v870_v3 = vmin.f32 %v869_v44, %v2569_v9  ;;  %v912_v4 = vmin.f32 %v911_v51, %v2572_v10  ;;  %v2627_v12 = vadd.f32 %v2502_v27, %v2486_v18 }
 0x114   : > { %v490_v20 = vpop.f32.mrf.mxu0  ;;  %v651_v21 = vpop.f32.mrf.mxu1 }
 0x115   : > { %v2589_v16 = vadd.f32 %v2530_v40, %v490_v20  ;;  %v2592_v54 = vadd.f32 %v2530_v40, %v651_v21  ;;  %v888_v21 = vmin.f32 %v887_v8, %v2578_v60  ;;  %3473 = vst [vmem:[#allocation23_spill] sm:$0xff] %v2627_v12  ;;  %v2629_v39 = vpop.permute.xlu0 %766 }
 0x116   : > { %v2492_v23 = vpop.f32.mrf.mxu0  ;;  %v2494_v24 = vpop.f32.mrf.mxu1 }
 0x117   : > { %3468 = vst [vmem:[#allocation18_spill] sm:$0xff] %v2592_v54  ;;  %v871_v44 = vmin.f32 %v870_v3, %v2589_v16  ;;  %v913_v51 = vmin.f32 %v912_v4, %v2592_v54  ;;  %v889_v8 = vmin.f32 %v888_v21, %v2597_v0  ;;  %v2642_v18 = vadd.f32 %v2530_v40, %v2492_v23 }
 0x118   : > { %v496_v28 = vpop.f32.mrf.mxu0  ;;  %v657_v29 = vpop.f32.mrf.mxu1 }
 0x119   : > { %v2602_v58 = vadd.f32 %v2540_v47, %v496_v28  ;;  %v2605_v20 = vadd.f32 %v2540_v47, %v657_v29  ;;  %v890_v21 = vmin.f32 %v889_v8, %v2610_v52  ;;  %3475 = vst [vmem:[#allocation25_spill] sm:$0xff] %v2642_v18 }
 0x11a   : > { %v2516_v34 = vpop.f32.mrf.mxu0  ;;  %v2518_v35 = vpop.f32.mrf.mxu1 }
 0x11b   : > { %3470 = vst [vmem:[#allocation20_spill] sm:$0xff] %v2605_v20  ;;  %v872_v3 = vmin.f32 %v871_v44, %v2602_v58  ;;  %v914_v4 = vmin.f32 %v913_v51, %v2605_v20  ;;  %v2657_v8 = vadd.f32 %v2540_v47, %v2516_v34  ;;  %v2659_v20 = vpop.permute.xlu1 %771 }
 0x11c   : > { %v502_v41 = vpop.f32.mrf.mxu0  ;;  %v663_v42 = vpop.f32.mrf.mxu1 }
 0x11d   : > { %v2619_v28 = vadd.f32 %v2566_v36, %v502_v41  ;;  %v2622_v29 = vadd.f32 %v2566_v36, %v663_v42  ;;  %3477 = vst [vmem:[#allocation27_spill] sm:$0xff] %v2657_v8 }
 0x11e   : > { %v2545_v49 = vpop.f32.mrf.mxu0  ;;  %v2547_v50 = vpop.f32.mrf.mxu1 }
 0x11f   : > { %3472 = vst [vmem:[#allocation22_spill] sm:$0xff] %v2622_v29  ;;  %v873_v33 = vmin.f32 %v872_v3, %v2619_v28  ;;  %v915_v44 = vmin.f32 %v914_v4, %v2622_v29 }
 0x120   : > { %v508_v62 = vpop.f32.mrf.mxu0  ;;  %v669_v63 = vpop.f32.mrf.mxu1 }
 0x121   : > { %v2634_v41 = vadd.f32 %v2586_v15, %v508_v62  ;;  %v2637_v42 = vadd.f32 %v2586_v15, %v669_v63  ;;  %v891_v63 = vmin.f32 %v890_v21, %v2627_v12  ;;  %v2671_v21 = vadd.f32 %v2476_v11, %v2460_v57 }
 0x122   : > { %v2580_v37 = vpop.f32.mrf.mxu0  ;;  %v2582_v43 = vpop.f32.mrf.mxu1  ;;  %v2676_v12 = vadd.f32 %v2566_v36, %v2545_v49  ;;  %v2692_v11 = vadd.f32 %v2468_v2, %v2458_v53  ;;  %v2696_v49 = vadd.f32 %v2470_v5, %v2462_v61  ;;  %v2715_v2 = vadd.f32 %v2482_v14, %v2466_v1 }
 0x123   : > { %3474 = vst [vmem:[#allocation24_spill] sm:$0xff] %v2637_v42  ;;  %v874_v3 = vmin.f32 %v873_v33, %v2634_v41  ;;  %v916_v4 = vmin.f32 %v915_v44, %v2637_v42  ;;  %3478 = vst [vmem:[#allocation28_spill] sm:$0xff] %v2671_v21  ;;  %v892_v34 = vmin.f32 %v891_v63, %v2642_v18  ;;  %v2680_v44 = vpop.permute.xlu0 %776 }
 0x124   : > { %v514_v48 = vpop.f32.mrf.mxu0  ;;  %v675_v59 = vpop.f32.mrf.mxu1  ;;  %3479 = vst [vmem:[#allocation29_spill] sm:$0xff] %v2676_v12  ;;  %3480 = vst [vmem:[#allocation30_spill] sm:$0xff] %v2692_v11  ;;  %v928_v61 = vmin.f32 %v2692_v11, %v2671_v21  ;;  %v2730_v1 = vadd.f32 %v2484_v17, %v2474_v7  ;;  %v2747_v17 = vadd.f32 %v2490_v22, %v2480_v13 }
 0x125   : > { %v2649_v51 = vadd.f32 %v2614_v46, %v514_v48  ;;  %v2652_v62 = vadd.f32 %v2614_v46, %v675_v59  ;;  %v893_v63 = vmin.f32 %v892_v34, %v2657_v8 }
 0x126   : > { %v516_v6 = vpop.f32.mrf.mxu0  ;;  %v2612_v56 = vpop.f32.mrf.mxu1  ;;  %v929_v21 = vmin.f32 %v928_v61, %v2696_v49  ;;  %3481 = vst [vmem:[#allocation31_spill] sm:$0xff] %v2730_v1  ;;  %3482 = vst [vmem:[#allocation32_spill] sm:$0xff] %v2747_v17 }
 0x127   : > { %3476 = vst [vmem:[#allocation26_spill] sm:$0xff] %v2652_v62  ;;  %v894_v5 = vmin.f32 %v893_v63, %v2676_v12 }
 0x128   : > { %v520_v60 = vpop.f32.mrf.mxu0  ;;  %v681_v10 = vpop.f32.mrf.mxu1  ;;  %v930_v7 = vmin.f32 %v929_v21, %v2715_v2 }
 0x129   : > { %v2664_v48 = vadd.f32 %v2629_v39, %v520_v60  ;;  %v2667_v59 = vadd.f32 %v2629_v39, %v681_v10  ;;  %v875_v60 = vmin.f32 %v874_v3, %v2649_v51  ;;  %v917_v10 = vmin.f32 %v916_v4, %v2652_v62 }
 0x12a   : > { %v522_v0 = vpop.f32.mrf.mxu0  ;;  %v2644_v54 = vpop.f32.mrf.mxu1  ;;  %v2701_v3 = vadd.f32 %v2586_v15, %v2580_v37 }
 0x12b   : > { %v876_v18 = vmin.f32 %v875_v60, %v2664_v48  ;;  %v2720_v60 = vpop.permute.xlu1 %781  ;;  %v2734_v63 = vadd.f32 %v2629_v39, %v522_v0 }
 0x12c   : > { %v526_v23 = vpop.f32.mrf.mxu0  ;;  %v687_v52 = vpop.f32.mrf.mxu1  ;;  %v895_v14 = vmin.f32 %v894_v5, %v2701_v3 }
 0x12d   : > { %v2685_v42 = vadd.f32 %v2659_v20, %v526_v23  ;;  %v2688_v57 = vadd.f32 %v2659_v20, %v687_v52  ;;  %v918_v52 = vmin.f32 %v917_v10, %v2667_v59  ;;  %v2723_v10 = vadd.f32 %v2614_v46, %v516_v6 }
 0x12e   : > { %v528_v29 = vpop.f32.mrf.mxu0  ;;  %v2678_v33 = vpop.f32.mrf.mxu1 }
 0x12f   : > { %v896_v0 = vmin.f32 %v895_v14, %v2723_v10  ;;  %v2751_v61 = vadd.f32 %v2659_v20, %v528_v29 }
 0x130   : > { %v532_v4 = vpop.f32.mrf.mxu0  ;;  %v693_v23 = vpop.f32.mrf.mxu1 }
 0x131   : > { %v2706_v62 = vadd.f32 %v2680_v44, %v532_v4  ;;  %v2709_v53 = vadd.f32 %v2680_v44, %v693_v23  ;;  %v877_v4 = vmin.f32 %v876_v18, %v2685_v42  ;;  %v919_v23 = vmin.f32 %v918_v52, %v2688_v57 }
 0x132   : > { %v534_v37 = vpop.f32.mrf.mxu0  ;;  %v2718_v34 = vpop.f32.mrf.mxu1 }
 0x133   : > { %v878_v6 = vmin.f32 %v877_v4, %v2706_v62  ;;  %v920_v8 = vmin.f32 %v919_v23, %v2709_v53  ;;  %v897_v23 = vmin.f32 %v896_v0, %v2734_v63  ;;  %v2762_v13 = vadd.f32 %v2680_v44, %v534_v37 }
 0x134   : > { %v538_v11 = vpop.f32.mrf.mxu0  ;;  %v699_v12 = vpop.f32.mrf.mxu1  ;;  %v2776_v37 = vadd.f32 %v2540_v47, %v2518_v35  ;;  %v2788_v35 = vadd.f32 %v2586_v15, %v2582_v43  ;;  %v2803_v43 = vadd.f32 %v2629_v39, %v2644_v54  ;;  %v2820_v54 = vadd.f32 %v2680_v44, %v2718_v34 }
 0x135   : > { %v2739_v18 = vadd.f32 %v2720_v60, %v538_v11  ;;  %v2742_v52 = vadd.f32 %v2720_v60, %v699_v12  ;;  %v931_v11 = vmin.f32 %v930_v7, %v2730_v1  ;;  %v2758_v12 = vadd.f32 %v2502_v27, %v2488_v19 }
 0x136   : > { %v540_v21 = vpop.f32.mrf.mxu0 }
 0x137   : > { %v879_v5 = vmin.f32 %v878_v6, %v2739_v18  ;;  %v921_v4 = vmin.f32 %v920_v8, %v2742_v52  ;;  %v932_v29 = vmin.f32 %v931_v11, %v2747_v17  ;;  %v2767_v6 = vadd.f32 %v2530_v40, %v2494_v24 }
 0x138   : > { %v898_v8 = vmin.f32 %v897_v23, %v2751_v61  ;;  %v2771_v19 = vadd.f32 %v2720_v60, %v540_v21  ;;  %v2782_v24 = vadd.f32 %v2566_v36, %v2547_v50  ;;  %v848_v40 = vlaneseq }
 0x139   : > { %v880_v22 = vrot.slane %v879_v5, 4  ;;  %v922_v14 = vrot.slane %v921_v4, 4  ;;  %v933_v27 = vmin.f32 %v932_v29, %v2758_v12 }
 0x13a   : > { %v899_v0 = vmin.f32 %v898_v8, %v2762_v13  ;;  %v2796_v50 = vshrl.u32 %v848_v40, 7 }
 0x13b   : > { %v881_v7 = vmin.f32 %v879_v5, %v880_v22  ;;  %v923_v11 = vmin.f32 %v921_v4, %v922_v14  ;;  %v934_v17 = vmin.f32 %v933_v27, %v2767_v6  ;;  %v2793_v14 = vadd.f32 %v2614_v46, %v2612_v56 }
 0x13c   : > { %v900_v21 = vmin.f32 %v899_v0, %v2771_v19  ;;  %v2807_v8 = vadd.s32 8, %v2796_v50  ;;  %v2811_v46 = vadd.f32 %v2659_v20, %v2678_v33  ;;  %v2823_v27 = vadd.s32 16, %v2796_v50 }
 0x13d   : > { %v882_v1 = vrot.slane %v881_v7, 2  ;;  %v935_v23 = vmin.f32 %v934_v17, %v2776_v37  ;;  %v924_v22 = vrot.slane %v923_v11, 2  ;;  %v2826_v20 = vadd.s32 24, %v2796_v50 }
 0x13f   : > { %v883_v5 = vmin.f32 %v881_v7, %v882_v1  ;;  %v936_v4 = vmin.f32 %v935_v23, %v2782_v24  ;;  %v901_v1 = vrot.slane %v900_v21, 4  ;;  %v925_v15 = vmin.f32 %v923_v11, %v924_v22  ;;  %v701_v7 = vpop.f32.mrf.mxu1 }
 0x140   : > { %v2837_v34 = vadd.f32 %v2720_v60, %v701_v7  ;;  %v2846_v23 = vadd.s32 56, %v2796_v50  ;;  %v2857_v60 = vadd.s32 72, %v2796_v50  ;;  %v2874_v7 = vadd.s32 96, %v2796_v50 }
 0x141   : > { %v884_v47 = vrot.slane %v883_v5, 1  ;;  %v937_v17 = vmin.f32 %v936_v4, %v2788_v35  ;;  %v902_v56 = vmin.f32 %v900_v21, %v901_v1  ;;  %v926_v0 = vrot.slane %v925_v15, 1 }
 0x142   : > { %v2843_v21 = vadd.s32 48, %v2796_v50  ;;  %v2860_v4 = vadd.s32 80, %v2796_v50 }
 0x143   : > { %v2798_v36 = vmin.f32 %v883_v5, %v884_v47  ;;  %v938_v29 = vmin.f32 %v937_v17, %v2793_v14  ;;  %v903_v44 = vrot.slane %v902_v56, 2  ;;  %v2840_v5 = vadd.s32 40, %v2796_v50 }
 0x144   : > { %v2849_v47 = vadd.s32 64, %v2796_v50 }
 0x145   : > { %vm949_vm1 = vcmp.eq.f32.partialorder %v2505_v30, %v2798_v36  ;;  %vm953_vm2 = vcmp.eq.f32.partialorder %v2497_v25, %v2798_v36  ;;  %v939_v39 = vmin.f32 %v938_v29, %v2803_v43  ;;  %v2829_v30 = vadd.s32 32, %v2796_v50 }
 0x146   : > { %v1013_v25 = vsel %vm949_vm1, %v2796_v50, 128  ;;  %v1017_v33 = vsel %vm953_vm2, %v2807_v8, 128  ;;  %vm957_vm3 = vcmp.eq.f32.partialorder %v2511_v32, %v2798_v36  ;;  %vm961_vm4 = vcmp.eq.f32.partialorder %v2525_v38, %v2798_v36 }
 0x147   : > { %v940_v11 = vmin.f32 %v939_v39, %v2811_v46  ;;  %vm1077_vm5 = vcmp.lt.s32.totalorder %v1013_v25, %v1017_v33  ;;  %v2854_v32 = vmin.f32 %v925_v15, %v926_v0  ;;  %v1021_v1 = vsel %vm957_vm3, %v2823_v27, 128 }
 0x148   : > { %v1078_v17 = vsel %vm1077_vm5, %v1013_v25, %v1017_v33  ;;  %vm965_vm6 = vcmp.eq.f32.partialorder %v2535_v45, %v2798_v36  ;;  %v2865_v29 = vmin.f32 %v902_v56, %v903_v44  ;;  %v2871_v15 = vadd.s32 88, %v2796_v50 }
 0x149   : > { %v941_v22 = vmin.f32 %v940_v11, %v2820_v54  ;;  %vm1079_vm7 = vcmp.lt.s32.totalorder %v1078_v17, %v1021_v1  ;;  %v1025_v39 = vsel %vm961_vm4, %v2826_v20, 128  ;;  %vm969_vm8 = vcmp.eq.f32.partialorder %v2552_v55, %v2798_v36 }
 0x14a   : > { %v1080_v0 = vsel %vm1079_vm7, %v1078_v17, %v1021_v1  ;;  %vm951_vm10 = vcmp.eq.f32.partialorder %v2508_v31, %v2854_v32  ;;  %vm955_vm11 = vcmp.eq.f32.partialorder %v2500_v26, %v2854_v32  ;;  %v2884_v45 = vadd.s32 104, %v2796_v50 }
 0x14b   : > { %v2868_v38 = vmin.f32 %v941_v22, %v2837_v34  ;;  %vm1081_vm9 = vcmp.lt.s32.totalorder %v1080_v0, %v1025_v39  ;;  %v2887_v56 = vadd.s32 112, %v2796_v50  ;;  %v1029_v25 = vsel %vm965_vm6, %v2829_v30, 128 }
 0x14c   : > { %v1082_v33 = vsel %vm1081_vm9, %v1080_v0, %v1025_v39  ;;  %vm973_vm12 = vcmp.eq.f32.partialorder %v2569_v9, %v2798_v36  ;;  %v905_v55 = vrot.slane %v2865_v29, 1  ;;  %v1033_v11 = vsel %vm969_vm8, %v2840_v5, 128  ;;  %v3483_v9 = vld [vmem:[#allocation9_spill] sm:$0xff] }
 0x14d   : > { %vm1083_vm13 = vcmp.lt.s32.totalorder %v1082_v33, %v1029_v25  ;;  %v943_v31 = vrot.slane %v2868_v38, 4  ;;  %v1015_v44 = vsel %vm951_vm10, %v2796_v50, 128  ;;  %v1019_v22 = vsel %vm955_vm11, %v2807_v8, 128 }
 0x14e   : > { %v1084_v26 = vsel %vm1083_vm13, %v1082_v33, %v1029_v25  ;;  %vm977_vm14 = vcmp.eq.f32.partialorder %v2589_v16, %v2798_v36  ;;  %vm981_vm15 = vcmp.eq.f32.partialorder %v2602_v58, %v2798_v36  ;;  %vm959_vm1 = vcmp.eq.f32.partialorder %v3483_v9, %v2854_v32  ;;  %v3484_v16 = vld [vmem:[#allocation10_spill] sm:$0xff] }
 0x14f   : > { %vm1085_vm0 = vcmp.lt.s32.totalorder %v1084_v26, %v1033_v11  ;;  %vm985_vm2 = vcmp.eq.f32.partialorder %v2619_v28, %v2798_v36  ;;  %vm989_vm3 = vcmp.eq.f32.partialorder %v2634_v41, %v2798_v36  ;;  %v1037_v1 = vsel %vm973_vm12, %v2843_v21, 128  ;;  %v3489_v41 = vld [vmem:[#allocation20_spill] sm:$0xff] }
 0x150   : > { %v1086_v17 = vsel %vm1085_vm0, %v1084_v26, %v1033_v11  ;;  %vm993_vm4 = vcmp.eq.f32.partialorder %v2649_v51, %v2798_v36  ;;  %vm963_vm6 = vcmp.eq.f32.partialorder %v3484_v16, %v2854_v32  ;;  %vm1155_vm7 = vcmp.lt.s32.totalorder %v1015_v44, %v1019_v22  ;;  %v3485_v11 = vld [vmem:[#allocation11_spill] sm:$0xff] }
 0x151   : > { %vm1087_vm5 = vcmp.lt.s32.totalorder %v1086_v17, %v1037_v1  ;;  %v1041_v39 = vsel %vm977_vm14, %v2846_v23, 128  ;;  %v1023_v25 = vsel %vm959_vm1, %v2823_v27, 128  ;;  %v1156_v33 = vsel %vm1155_vm7, %v1015_v44, %v1019_v22  ;;  %v3486_v44 = vld [vmem:[#allocation13_spill] sm:$0xff] }
 0x152   : > { %v1088_v0 = vsel %vm1087_vm5, %v1086_v17, %v1037_v1  ;;  %vm997_vm8 = vcmp.eq.f32.partialorder %v2664_v48, %v2798_v36  ;;  %vm967_vm10 = vcmp.eq.f32.partialorder %v3485_v11, %v2854_v32  ;;  %vm1157_vm11 = vcmp.lt.s32.totalorder %v1156_v33, %v1023_v25 }
 0x153   : > { %vm1089_vm9 = vcmp.lt.s32.totalorder %v1088_v0, %v1041_v39  ;;  %v1045_v26 = vsel %vm981_vm15, %v2849_v47, 128  ;;  %v1027_v16 = vsel %vm963_vm6, %v2826_v20, 128  ;;  %v1158_v1 = vsel %vm1157_vm11, %v1156_v33, %v1023_v25  ;;  %v3487_v25 = vld [vmem:[#allocation16_spill] sm:$0xff] }
 0x154   : > { %v1090_v9 = vsel %vm1089_vm9, %v1088_v0, %v1041_v39  ;;  %vm1001_vm12 = vcmp.eq.f32.partialorder %v2685_v42, %v2798_v36  ;;  %vm971_vm14 = vcmp.eq.f32.partialorder %v3486_v44, %v2854_v32  ;;  %vm1159_vm0 = vcmp.lt.s32.totalorder %v1158_v1, %v1027_v16  ;;  %v3492_v42 = vld [vmem:[#allocation12_spill] sm:$0xff] }
 0x155   : > { %vm1091_vm13 = vcmp.lt.s32.totalorder %v1090_v9, %v1045_v26  ;;  %v1049_v22 = vsel %vm985_vm2, %v2857_v60, 128  ;;  %v1031_v58 = vsel %vm967_vm10, %v2829_v30, 128  ;;  %v1160_v39 = vsel %vm1159_vm0, %v1158_v1, %v1027_v16 }
 0x156   : > { %v1092_v17 = vsel %vm1091_vm13, %v1090_v9, %v1045_v26  ;;  %v1053_v0 = vsel %vm989_vm3, %v2860_v4, 128  ;;  %vm975_vm1 = vcmp.eq.f32.partialorder %v3487_v25, %v2854_v32  ;;  %vm1161_vm5 = vcmp.lt.s32.totalorder %v1160_v39, %v1031_v58  ;;  %v3488_v9 = vld [vmem:[#allocation18_spill] sm:$0xff] }
 0x157   : > { %vm1093_vm15 = vcmp.lt.s32.totalorder %v1092_v17, %v1049_v22  ;;  %v1057_v28 = vsel %vm993_vm4, %v2871_v15, 128  ;;  %v1035_v11 = vsel %vm971_vm14, %v2840_v5, 128  ;;  %v1162_v26 = vsel %vm1161_vm5, %v1160_v39, %v1031_v58 }
 0x158   : > { %v1094_v33 = vsel %vm1093_vm15, %v1092_v17, %v1049_v22  ;;  %vm979_vm6 = vcmp.eq.f32.partialorder %v3488_v9, %v2854_v32  ;;  %vm983_vm3 = vcmp.eq.f32.partialorder %v3489_v41, %v2854_v32  ;;  %vm1163_vm7 = vcmp.lt.s32.totalorder %v1162_v26, %v1035_v11 }
 0x159   : > { %vm1095_vm2 = vcmp.lt.s32.totalorder %v1094_v33, %v1053_v0  ;;  %v1039_v1 = vsel %vm975_vm1, %v2843_v21, 128  ;;  %v1164_v44 = vsel %vm1163_vm7, %v1162_v26, %v1035_v11  ;;  %v2949_v25 = vmin.f32 %v2865_v29, %v905_v55  ;;  %v3490_v29 = vld [vmem:[#allocation22_spill] sm:$0xff] }
 0x15a   : > { %v1096_v16 = vsel %vm1095_vm2, %v1094_v33, %v1053_v0  ;;  %v1061_v51 = vsel %vm997_vm8, %v2874_v7, 128  ;;  %vm1165_vm9 = vcmp.lt.s32.totalorder %v1164_v44, %v1039_v1  ;;  %v944_v22 = vmin.f32 %v2868_v38, %v943_v31  ;;  %v3491_v31 = vld [vmem:[#allocation14_spill] sm:$0xff] }
 0x15b   : > { %vm1097_vm4 = vcmp.lt.s32.totalorder %v1096_v16, %v1057_v28  ;;  %v1065_v17 = vsel %vm1001_vm12, %v2884_v45, 128  ;;  %v1043_v39 = vsel %vm979_vm6, %v2846_v23, 128  ;;  %v1166_v0 = vsel %vm1165_vm9, %v1164_v44, %v1039_v1 }
 0x15c   : > { %v1098_v58 = vsel %vm1097_vm4, %v1096_v16, %v1057_v28  ;;  %vm987_vm11 = vcmp.eq.f32.partialorder %v3490_v29, %v2854_v32  ;;  %v1047_v48 = vsel %vm983_vm3, %v2849_v47, 128  ;;  %vm1167_vm8 = vcmp.lt.s32.totalorder %v1166_v0, %v1043_v39  ;;  %v3493_v28 = vld [vmem:[#allocation24_spill] sm:$0xff] }
 0x15d   : > { %vm1099_vm10 = vcmp.lt.s32.totalorder %v1098_v58, %v1061_v51  ;;  %v1168_v55 = vsel %vm1167_vm8, %v1166_v0, %v1043_v39  ;;  %vm950_vm13 = vcmp.eq.f32.partialorder %v3491_v31, %v2949_v25  ;;  %vm954_vm12 = vcmp.eq.f32.partialorder %v3492_v42, %v2949_v25  ;;  %v3495_v39 = vld [vmem:[#allocation26_spill] sm:$0xff]  ;;  %v3496_v0 = vld [vmem:[#allocation17_spill] sm:$0xff]  ;;  %v3497_v31 = vld [vmem:[#allocation19_spill] sm:$0xff] }
 0x15e   : > { %v1100_v38 = vsel %vm1099_vm10, %v1098_v58, %v1061_v51  ;;  %vm991_vm0 = vcmp.eq.f32.partialorder %v3493_v28, %v2854_v32  ;;  %vm1169_vm15 = vcmp.lt.s32.totalorder %v1168_v55, %v1047_v48  ;;  %v945_v33 = vrot.slane %v944_v22, 2  ;;  %v3494_v51 = vld [vmem:[#allocation15_spill] sm:$0xff] }
 0x15f   : > { %vm1101_vm14 = vcmp.lt.s32.totalorder %v1100_v38, %v1065_v17  ;;  %vm1005_vm1 = vcmp.eq.f32.partialorder %v2706_v62, %v2798_v36  ;;  %v1051_v11 = vsel %vm987_vm11, %v2857_v60, 128  ;;  %v1170_v26 = vsel %vm1169_vm15, %v1168_v55, %v1047_v48 }
 0x160   : > { %v1102_v9 = vsel %vm1101_vm14, %v1100_v38, %v1065_v17  ;;  %vm1171_vm5 = vcmp.lt.s32.totalorder %v1170_v26, %v1051_v11  ;;  %v1014_v41 = vsel %vm950_vm13, %v2796_v50, 128  ;;  %v1018_v16 = vsel %vm954_vm12, %v2807_v8, 128 }
 0x161   : > { %v1055_v1 = vsel %vm991_vm0, %v2860_v4, 128  ;;  %v1172_v44 = vsel %vm1171_vm5, %v1170_v26, %v1051_v11  ;;  %vm958_vm2 = vcmp.eq.f32.partialorder %v3494_v51, %v2949_v25  ;;  %v1069_v58 = vsel %vm1005_vm1, %v2887_v56, 128 }
 0x162   : > { %vm995_vm6 = vcmp.eq.f32.partialorder %v3495_v39, %v2854_v32  ;;  %vm1173_vm3 = vcmp.lt.s32.totalorder %v1172_v44, %v1055_v1  ;;  %v946_v62 = vmin.f32 %v944_v22, %v945_v33  ;;  %vm1103_vm7 = vcmp.lt.s32.totalorder %v1102_v9, %v1069_v58  ;;  %v3498_v33 = vld [vmem:[#allocation21_spill] sm:$0xff] }
 0x163   : > { %v1174_v17 = vsel %vm1173_vm3, %v1172_v44, %v1055_v1  ;;  %vm962_vm4 = vcmp.eq.f32.partialorder %v3496_v0, %v2949_v25  ;;  %vm1116_vm9 = vcmp.lt.s32.totalorder %v1014_v41, %v1018_v16  ;;  %v2987_v29 = vadd.s32 120, %v2796_v50  ;;  %v3500_v44 = vld [vmem:[#allocation25_spill] sm:$0xff] }
 0x164   : > { %v1022_v48 = vsel %vm958_vm2, %v2823_v27, 128  ;;  %v1117_v38 = vsel %vm1116_vm9, %v1014_v41, %v1018_v16  ;;  %vm1009_vm10 = vcmp.eq.f32.partialorder %v2739_v18, %v2798_v36  ;;  %v1059_v55 = vsel %vm995_vm6, %v2871_v15, 128 }
 0x165   : > { %vm966_vm11 = vcmp.eq.f32.partialorder %v3497_v31, %v2949_v25  ;;  %vm1118_vm8 = vcmp.lt.s32.totalorder %v1117_v38, %v1022_v48  ;;  %v1104_v22 = vsel %vm1103_vm7, %v1102_v9, %v1069_v58  ;;  %vm1175_vm13 = vcmp.lt.s32.totalorder %v1174_v17, %v1059_v55  ;;  %v3499_v9 = vld [vmem:[#allocation23_spill] sm:$0xff] }
 0x166   : > { %v1026_v42 = vsel %vm962_vm4, %v2826_v20, 128  ;;  %v1119_v28 = vsel %vm1118_vm8, %v1117_v38, %v1022_v48  ;;  %vm970_vm12 = vcmp.eq.f32.partialorder %v3498_v33, %v2949_v25  ;;  %v947_v11 = vrot.slane %v946_v62, 1 }
 0x167   : > { %vm1120_vm14 = vcmp.lt.s32.totalorder %v1119_v28, %v1026_v42  ;;  %v1073_v26 = vsel %vm1009_vm10, %v2987_v29, 128  ;;  %vm999_vm0 = vcmp.eq.f32.partialorder %v2667_v59, %v2854_v32  ;;  %v1030_v18 = vsel %vm966_vm11, %v2829_v30, 128 }
 0x168   : > { %v1121_v36 = vsel %vm1120_vm14, %v1119_v28, %v1026_v42  ;;  %vm1105_vm15 = vcmp.lt.s32.totalorder %v1104_v22, %v1073_v26  ;;  %v1176_v41 = vsel %vm1175_vm13, %v1174_v17, %v1059_v55  ;;  %vm974_vm1 = vcmp.eq.f32.partialorder %v3499_v9, %v2949_v25  ;;  %v3503_v42 = vld [vmem:[#allocation30_spill] sm:$0xff]  ;;  %v3504_v28 = vld [vmem:[#allocation28_spill] sm:$0xff] }
 0x169   : > { %vm1122_vm5 = vcmp.lt.s32.totalorder %v1121_v36, %v1030_v18  ;;  %vm1003_vm2 = vcmp.eq.f32.partialorder %v2688_v57, %v2854_v32  ;;  %v1034_v16 = vsel %vm970_vm12, %v2840_v5, 128  ;;  %vm1007_vm6 = vcmp.eq.f32.partialorder %v2709_v53, %v2854_v32  ;;  %v3501_v57 = vld [vmem:[#allocation27_spill] sm:$0xff] }
 0x16a   : > { %v1123_v1 = vsel %vm1122_vm5, %v1121_v36, %v1030_v18  ;;  %v1063_v59 = vsel %vm999_vm0, %v2874_v7, 128  ;;  %vm978_vm3 = vcmp.eq.f32.partialorder %v3500_v44, %v2949_v25  ;;  %v1106_v51 = vsel %vm1105_vm15, %v1104_v22, %v1073_v26  ;;  %v3502_v22 = vld [vmem:[#allocation29_spill] sm:$0xff] }
 0x16b   : > { %vm1124_vm7 = vcmp.lt.s32.totalorder %v1123_v1, %v1034_v16  ;;  %vm1177_vm4 = vcmp.lt.s32.totalorder %v1176_v41, %v1063_v59  ;;  %v1038_v58 = vsel %vm974_vm1, %v2843_v21, 128  ;;  %vm1011_vm9 = vcmp.eq.f32.partialorder %v2742_v52, %v2854_v32 }
 0x16c   : > { %v1125_v39 = vsel %vm1124_vm7, %v1123_v1, %v1034_v16  ;;  %vm982_vm10 = vcmp.eq.f32.partialorder %v3501_v57, %v2949_v25  ;;  %v3017_v17 = vmin.f32 %v946_v62, %v947_v11  ;;  %v1067_v53 = vsel %vm1003_vm2, %v2884_v45, 128 }
 0x16d   : > { %vm1126_vm11 = vcmp.lt.s32.totalorder %v1125_v39, %v1038_v58  ;;  %v1071_v0 = vsel %vm1007_vm6, %v2887_v56, 128  ;;  %v1042_v48 = vsel %vm978_vm3, %v2846_v23, 128  ;;  %v1107_v55 = vrot.slane %v1106_v51, 4 }
 0x16e   : > { %v1127_v38 = vsel %vm1126_vm11, %v1125_v39, %v1038_v58  ;;  %v1178_v31 = vsel %vm1177_vm4, %v1176_v41, %v1063_v59  ;;  %vm986_vm8 = vcmp.eq.f32.partialorder %v3502_v22, %v2949_v25  ;;  %v3025_v52 = vsel %vm1011_vm9, %v2987_v29, 128  ;;  %v3505_v58 = vld [vmem:[#allocation31_spill] sm:$0xff] }
 0x16f   : > { %vm1128_vm13 = vcmp.lt.s32.totalorder %v1127_v38, %v1042_v48  ;;  %vm990_vm12 = vcmp.eq.f32.partialorder %v2701_v3, %v2949_v25  ;;  %v1046_v32 = vsel %vm982_vm10, %v2849_v47, 128  ;;  %vm994_vm14 = vcmp.eq.f32.partialorder %v2723_v10, %v2949_v25 }
 0x170   : > { %v1129_v62 = vsel %vm1128_vm13, %v1127_v38, %v1042_v48  ;;  %vm952_vm15 = vcmp.eq.f32.partialorder %v3503_v42, %v3017_v17  ;;  %vm956_vm1 = vcmp.eq.f32.partialorder %v3504_v28, %v3017_v17  ;;  %vm1179_vm5 = vcmp.lt.s32.totalorder %v1178_v31, %v1067_v53  ;;  %v3506_v48 = vld [vmem:[#allocation32_spill] sm:$0xff] }
 0x171   : > { %vm1130_vm0 = vcmp.lt.s32.totalorder %v1129_v62, %v1046_v32  ;;  %vm998_vm2 = vcmp.eq.f32.partialorder %v2734_v63, %v2949_v25  ;;  %v1050_v33 = vsel %vm986_vm8, %v2857_v60, 128  ;;  %vm1108_vm6 = vcmp.lt.s32.totalorder %v1106_v51, %v1107_v55 }
 0x172   : > { %v1131_v3 = vsel %vm1130_vm0, %v1129_v62, %v1046_v32  ;;  %vm1002_vm3 = vcmp.eq.f32.partialorder %v2751_v61, %v2949_v25  ;;  %vm1006_vm7 = vcmp.eq.f32.partialorder %v2762_v13, %v2949_v25  ;;  %v1054_v11 = vsel %vm990_vm12, %v2860_v4, 128 }
 0x173   : > { %vm1132_vm4 = vcmp.lt.s32.totalorder %v1131_v3, %v1050_v33  ;;  %v1016_v18 = vsel %vm952_vm15, %v2796_v50, 128  ;;  %v1020_v36 = vsel %vm956_vm1, %v2807_v8, 128  ;;  %v1180_v41 = vsel %vm1179_vm5, %v1178_v31, %v1067_v53 }
 0x174   : > { %v1133_v26 = vsel %vm1132_vm4, %v1131_v3, %v1050_v33  ;;  %vm1010_vm9 = vcmp.eq.f32.partialorder %v2771_v19, %v2949_v25  ;;  %vm960_vm11 = vcmp.eq.f32.partialorder %v2696_v49, %v3017_v17  ;;  %v1109_v61 = vsel %vm1108_vm6, %v1106_v51, %v1107_v55 }
 0x175   : > { %vm1134_vm10 = vcmp.lt.s32.totalorder %v1133_v26, %v1054_v11  ;;  %v1058_v9 = vsel %vm994_vm14, %v2871_v15, 128  ;;  %v1062_v16 = vsel %vm998_vm2, %v2874_v7, 128  ;;  %v1066_v59 = vsel %vm1002_vm3, %v2884_v45, 128 }
 0x176   : > { %v1135_v1 = vsel %vm1134_vm10, %v1133_v26, %v1054_v11  ;;  %vm964_vm13 = vcmp.eq.f32.partialorder %v2715_v2, %v3017_v17  ;;  %vm1194_vm12 = vcmp.lt.s32.totalorder %v1016_v18, %v1020_v36  ;;  %vm1181_vm0 = vcmp.lt.s32.totalorder %v1180_v41, %v1071_v0 }
 0x177   : > { %vm1136_vm8 = vcmp.lt.s32.totalorder %v1135_v1, %v1058_v9  ;;  %v1024_v44 = vsel %vm960_vm11, %v2823_v27, 128  ;;  %v1195_v51 = vsel %vm1194_vm12, %v1016_v18, %v1020_v36  ;;  %v1110_v10 = vrot.slane %v1109_v61, 2 }
 0x178   : > { %v1137_v49 = vsel %vm1136_vm8, %v1135_v1, %v1058_v9  ;;  %vm968_vm15 = vcmp.eq.f32.partialorder %v3505_v58, %v3017_v17  ;;  %vm1196_vm1 = vcmp.lt.s32.totalorder %v1195_v51, %v1024_v44  ;;  %v1070_v63 = vsel %vm1006_vm7, %v2887_v56, 128 }
 0x179   : > { %vm1138_vm14 = vcmp.lt.s32.totalorder %v1137_v49, %v1062_v16  ;;  %v1028_v2 = vsel %vm964_vm13, %v2826_v20, 128  ;;  %v1197_v57 = vsel %vm1196_vm1, %v1195_v51, %v1024_v44  ;;  %v1182_v53 = vsel %vm1181_vm0, %v1180_v41, %v1071_v0 }
 0x17a   : > { %v1139_v39 = vsel %vm1138_vm14, %v1137_v49, %v1062_v16  ;;  %vm972_vm2 = vcmp.eq.f32.partialorder %v3506_v48, %v3017_v17  ;;  %vm1198_vm6 = vcmp.lt.s32.totalorder %v1197_v57, %v1028_v2  ;;  %v1074_v38 = vsel %vm1010_vm9, %v2987_v29, 128 }
 0x17b   : > { %vm1140_vm5 = vcmp.lt.s32.totalorder %v1139_v39, %v1066_v59  ;;  %v1032_v31 = vsel %vm968_vm15, %v2829_v30, 128  ;;  %v1199_v13 = vsel %vm1198_vm6, %v1197_v57, %v1028_v2  ;;  %vm1111_vm3 = vcmp.lt.s32.totalorder %v1109_v61, %v1110_v10 }
 0x17c   : > { %v1141_v55 = vsel %vm1140_vm5, %v1139_v39, %v1066_v59  ;;  %vm976_vm4 = vcmp.eq.f32.partialorder %v2758_v12, %v3017_v17  ;;  %vm1200_vm10 = vcmp.lt.s32.totalorder %v1199_v13, %v1032_v31  ;;  %vm1183_vm11 = vcmp.lt.s32.totalorder %v1182_v53, %v3025_v52 }
 0x17d   : > { %vm1142_vm7 = vcmp.lt.s32.totalorder %v1141_v55, %v1070_v63  ;;  %v1036_v22 = vsel %vm972_vm2, %v2840_v5, 128  ;;  %v1201_v32 = vsel %vm1200_vm10, %v1199_v13, %v1032_v31  ;;  %vm980_vm9 = vcmp.eq.f32.partialorder %v2767_v6, %v3017_v17 }
 0x17e   : > { %v1143_v0 = vsel %vm1142_vm7, %v1141_v55, %v1070_v63  ;;  %vm1202_vm13 = vcmp.lt.s32.totalorder %v1201_v32, %v1036_v22  ;;  %v1112_v19 = vsel %vm1111_vm3, %v1109_v61, %v1110_v10  ;;  %v1040_v62 = vsel %vm976_vm4, %v2843_v21, 128 }
 0x17f   : > { %vm1144_vm8 = vcmp.lt.s32.totalorder %v1143_v0, %v1074_v38  ;;  %v1203_v42 = vsel %vm1202_vm13, %v1201_v32, %v1036_v22  ;;  %v1184_v28 = vsel %vm1183_vm11, %v1182_v53, %v3025_v52  ;;  %vm984_vm12 = vcmp.eq.f32.partialorder %v2776_v37, %v3017_v17 }
 0x180   : > { %v1145_v25 = vsel %vm1144_vm8, %v1143_v0, %v1074_v38  ;;  %vm1204_vm0 = vcmp.lt.s32.totalorder %v1203_v42, %v1040_v62  ;;  %v1044_v33 = vsel %vm980_vm9, %v2846_v23, 128  ;;  %v1113_v11 = vrot.slane %v1112_v19, 1 }
 0x181   : > { %v1146_v12 = vrot.slane %v1145_v25, 4  ;;  %v1205_v3 = vsel %vm1204_vm0, %v1203_v42, %v1040_v62  ;;  %vm988_vm15 = vcmp.eq.f32.partialorder %v2782_v24, %v3017_v17  ;;  %v1185_v6 = vrot.slane %v1184_v28, 4 }
 0x182   : > { %vm1206_vm1 = vcmp.lt.s32.totalorder %v1205_v3, %v1044_v33  ;;  %v1048_v18 = vsel %vm984_vm12, %v2849_v47, 128  ;;  %vm992_vm5 = vcmp.eq.f32.partialorder %v2788_v35, %v3017_v17  ;;  %v1052_v37 = vsel %vm988_vm15, %v2857_v60, 128 }
 0x183   : > { %vm1147_vm14 = vcmp.lt.s32.totalorder %v1145_v25, %v1146_v12  ;;  %v1207_v36 = vsel %vm1206_vm1, %v1205_v3, %v1044_v33  ;;  %vm1114_vm6 = vcmp.lt.s32.totalorder %v1112_v19, %v1113_v11  ;;  %vm996_vm7 = vcmp.eq.f32.partialorder %v2793_v14, %v3017_v17 }
 0x184   : > { %v1148_v26 = vsel %vm1147_vm14, %v1145_v25, %v1146_v12  ;;  %vm1208_vm2 = vcmp.lt.s32.totalorder %v1207_v36, %v1048_v18  ;;  %vm1186_vm10 = vcmp.lt.s32.totalorder %v1184_v28, %v1185_v6  ;;  %v1056_v61 = vsel %vm992_vm5, %v2860_v4, 128 }
 0x185   : > { %v1149_v52 = vrot.slane %v1148_v26, 2  ;;  %v1209_v41 = vsel %vm1208_vm2, %v1207_v36, %v1048_v18  ;;  %vm1000_vm11 = vcmp.eq.f32.partialorder %v2803_v43, %v3017_v17  ;;  %vm1004_vm9 = vcmp.eq.f32.partialorder %v2811_v46, %v3017_v17 }
 0x186   : > { %vm1210_vm4 = vcmp.lt.s32.totalorder %v1209_v41, %v1052_v37  ;;  %v1060_v35 = vsel %vm996_vm7, %v2871_v15, 128  ;;  %v3101_v59 = vsel %vm1114_vm6, %v1112_v19, %v1113_v11  ;;  %v1187_v14 = vsel %vm1186_vm10, %v1184_v28, %v1185_v6  ;;  %v316_v28 = vld [vmem:[%s3509_s1 + $0x8] sm:$0xff] }
 0x187   : > { %vm1150_vm3 = vcmp.lt.s32.totalorder %v1148_v26, %v1149_v52  ;;  %v1211_v9 = vsel %vm1210_vm4, %v1209_v41, %v1052_v37  ;;  %v1064_v44 = vsel %vm1000_vm11, %v2874_v7, 128  ;;  %vm1008_vm0 = vcmp.eq.f32.partialorder %v2820_v54, %v3017_v17 }
 0x188   : > { %v1151_v24 = vsel %vm1150_vm3, %v1148_v26, %v1149_v52  ;;  %vm1212_vm8 = vcmp.lt.s32.totalorder %v1211_v9, %v1056_v61  ;;  %v1188_v43 = vrot.slane %v1187_v14, 2  ;;  %v1068_v46 = vsel %vm1004_vm9, %v2884_v45, 128 }
 0x189   : > { %v1152_v16 = vrot.slane %v1151_v24, 1  ;;  %v1213_v1 = vsel %vm1212_vm8, %v1211_v9, %v1056_v61  ;;  %v2166_v58 = vmov 1.0   ;;  %vm1322_vm1 = vcmp.eq.s32.totalorder %v2987_v29, %v3101_v59 }
 0x18a   : > { %vm1214_vm12 = vcmp.lt.s32.totalorder %v1213_v1, %v1060_v35  ;;  %vm1012_vm5 = vcmp.eq.f32.partialorder %v2837_v34, %v3017_v17  ;;  %v1072_v54 = vsel %vm1008_vm0, %v2887_v56, 128  ;;  %vm1318_vm3 = vcmp.eq.s32.totalorder %v2887_v56, %v3101_v59 }
 0x18b   : > { %vm1153_vm13 = vcmp.lt.s32.totalorder %v1151_v24, %v1152_v16  ;;  %v1215_v51 = vsel %vm1214_vm12, %v1213_v1, %v1060_v35  ;;  %vm1189_vm10 = vcmp.lt.s32.totalorder %v1187_v14, %v1188_v43  ;;  %v1076_v34 = vsel %vm1012_vm5, %v2987_v29, 128 }
 0x18c   : > { %v3103_v49 = vsel %vm1153_vm13, %v1151_v24, %v1152_v16  ;;  %vm1216_vm14 = vcmp.lt.s32.totalorder %v1215_v51, %v1064_v44  ;;  %vm1314_vm11 = vcmp.eq.s32.totalorder %v2884_v45, %v3101_v59  ;;  %vm1310_vm13 = vcmp.eq.s32.totalorder %v2874_v7, %v3101_v59 }
 0x18d   : > { %vm1323_vm15 = vcmp.eq.s32.totalorder %v2987_v29, %v3103_v49  ;;  %v1217_v10 = vsel %vm1216_vm14, %v1215_v51, %v1064_v44  ;;  %vm1319_vm6 = vcmp.eq.s32.totalorder %v2887_v56, %v3103_v49  ;;  %vm1315_vm4 = vcmp.eq.s32.totalorder %v2884_v45, %v3103_v49 }
 0x18e   : > { %1881 = vmatprep.subr.msk.mxu0 %vm1323_vm15, %v2166_v58  ;;  %vm1218_vm2 = vcmp.lt.s32.totalorder %v1217_v10, %v1068_v46  ;;  %vm1311_vm9 = vcmp.eq.s32.totalorder %v2874_v7, %v3103_v49  ;;  %v1190_v2 = vsel %vm1189_vm10, %v1187_v14, %v1188_v43  ;;  %vm1307_vm12 = vcmp.eq.s32.totalorder %v2871_v15, %v3103_v49 }
 0x18f   : > { %1882 = vmatpush1.msk.msra.mxu0 %vm1322_vm1, %v2166_v58  ;;  %v1219_v63 = vsel %vm1218_vm2, %v1217_v10, %v1068_v46  ;;  %vm1306_vm0 = vcmp.eq.s32.totalorder %v2871_v15, %v3101_v59  ;;  %vm1303_vm15 = vcmp.eq.s32.totalorder %v2860_v4, %v3103_v49  ;;  %v1191_v53 = vrot.slane %v1190_v2, 1 }
 0x190   : > { %1883 = vmatprep.subr.msk.mxu0 %vm1319_vm6, %v2166_v58  ;;  %vm1220_vm7 = vcmp.lt.s32.totalorder %v1219_v63, %v1072_v54  ;;  %vm1302_vm1 = vcmp.eq.s32.totalorder %v2860_v4, %v3101_v59  ;;  %vm1299_vm5 = vcmp.eq.s32.totalorder %v2857_v60, %v3103_v49  ;;  %v2167_v55 = vmov 1966171168  }
 0x191   : > { %1884 = vmatpush1.msk.msra.mxu0 %vm1318_vm3, %v2166_v58  ;;  %v1221_v17 = vsel %vm1220_vm7, %v1219_v63, %v1072_v54  ;;  %v1236_v31 = vunpack.c.l.s4 %v2167_v55  ;;  %vm1298_vm2 = vcmp.eq.s32.totalorder %v2857_v60, %v3101_v59  ;;  %vm1295_vm3 = vcmp.eq.s32.totalorder %v2849_v47, %v3103_v49 }
 0x192   : > { %1885 = vmatprep.subr.msk.mxu0 %vm1315_vm4, %v2166_v58  ;;  %vm1222_vm8 = vcmp.lt.s32.totalorder %v1221_v17, %v1076_v34  ;;  %vm1192_vm7 = vcmp.lt.s32.totalorder %v1190_v2, %v1191_v53  ;;  %vm1294_vm4 = vcmp.eq.s32.totalorder %v2849_v47, %v3101_v59  ;;  %vm1291_vm10 = vcmp.eq.s32.totalorder %v2846_v23, %v3103_v49 }
 0x193   : > { %1886 = vmatpush1.msk.msra.mxu0 %vm1314_vm11, %v2166_v58  ;;  %v1223_v39 = vsel %vm1222_vm8, %v1221_v17, %v1076_v34  ;;  %v1237_v22 = vunpack.c.0.s8 %v1236_v31  ;;  %vm1290_vm11 = vcmp.eq.s32.totalorder %v2846_v23, %v3101_v59  ;;  %v3166_v32 = vsel %vm1192_vm7, %v1190_v2, %v1191_v53 }
 0x194   : > { %1887 = vmatprep.subr.msk.mxu0 %vm1311_vm9, %v2166_v58  ;;  %v1224_v57 = vrot.slane %v1223_v39, 4  ;;  %vm1287_vm9 = vcmp.eq.s32.totalorder %v2843_v21, %v3103_v49  ;;  %v1233_v25 = vcombine.low %v3101_v59, %v3103_v49  ;;  %vm1316_vm7 = vcmp.eq.s32.totalorder %v2884_v45, %v3166_v32 }
 0x195   : > { %1888 = vmatpush1.msk.msra.mxu0 %vm1310_vm13, %v2166_v58  ;;  %vm1286_vm13 = vcmp.eq.s32.totalorder %v2843_v21, %v3101_v59  ;;  %v1240_v62 = vsub.s32 %v1237_v22, %v2796_v50 }
 0x196   : > { %1889 = vmatprep.subr.msk.mxu0 %vm1307_vm12, %v2166_v58  ;;  %vm1225_vm14 = vcmp.lt.s32.totalorder %v1223_v39, %v1224_v57 }
 0x197   : > { %1890 = vmatpush1.msk.msra.mxu0 %vm1306_vm0, %v2166_v58  ;;  %v1226_v48 = vsel %vm1225_vm14, %v1223_v39, %v1224_v57  ;;  %vm1324_vm0 = vcmp.eq.s32.totalorder %v2987_v29, %v3166_v32  ;;  %vm1283_vm14 = vcmp.eq.s32.totalorder %v2840_v5, %v3103_v49 }
 0x198   : > { %1891 = vmatprep.subr.msk.mxu0 %vm1303_vm15, %v2166_v58  ;;  %v1227_v38 = vrot.slane %v1226_v48, 2 }
 0x199   : > { %1892 = vmatpush1.msk.msra.mxu0 %vm1302_vm1, %v2166_v58  ;;  %vm1282_vm1 = vcmp.eq.s32.totalorder %v2840_v5, %v3101_v59 }
 0x19a   : > { %1893 = vmatprep.subr.msk.mxu0 %vm1299_vm5, %v2166_v58  ;;  %vm1228_vm6 = vcmp.lt.s32.totalorder %v1226_v48, %v1227_v38  ;;  %vm1320_vm5 = vcmp.eq.s32.totalorder %v2887_v56, %v3166_v32 }
 0x19b   : > { %1894 = vmatpush1.msk.msra.mxu0 %vm1298_vm2, %v2166_v58  ;;  %v1229_v13 = vsel %vm1228_vm6, %v1226_v48, %v1227_v38  ;;  %vm1279_vm2 = vcmp.eq.s32.totalorder %v2829_v30, %v3103_v49  ;;  %vm1278_vm6 = vcmp.eq.s32.totalorder %v2829_v30, %v3101_v59 }
 0x19c   : > { %1895 = vmatprep.subr.msk.mxu0 %vm1295_vm3, %v2166_v58  ;;  %v1230_v0 = vrot.slane %v1229_v13, 1 }
 0x19d   : > { %1896 = vmatpush1.msk.msra.mxu0 %vm1294_vm4, %v2166_v58  ;;  %vm1275_vm4 = vcmp.eq.s32.totalorder %v2826_v20, %v3103_v49 }
 0x19e   : > { %1897 = vmatprep.subr.msk.mxu0 %vm1291_vm10, %v2166_v58  ;;  %vm1231_vm8 = vcmp.lt.s32.totalorder %v1229_v13, %v1230_v0 }
 0x19f   : > { %1898 = vmatpush1.msk.msra.mxu0 %vm1290_vm11, %v2166_v58  ;;  %v3171_v19 = vsel %vm1231_vm8, %v1229_v13, %v1230_v0  ;;  %vm1274_vm11 = vcmp.eq.s32.totalorder %v2826_v20, %v3101_v59  ;;  %vm1312_vm8 = vcmp.eq.s32.totalorder %v2874_v7, %v3166_v32 }
 0x1a0   : > { %1899 = vmatprep.subr.msk.mxu0 %vm1287_vm9, %v2166_v58  ;;  %vm1325_vm12 = vcmp.eq.s32.totalorder %v2987_v29, %v3171_v19  ;;  %vm1321_vm15 = vcmp.eq.s32.totalorder %v2887_v56, %v3171_v19  ;;  %vm1317_vm3 = vcmp.eq.s32.totalorder %v2884_v45, %v3171_v19  ;;  %v1234_v29 = vcombine.low %v3166_v32, %v3171_v19 }
 0x1a1   : > { %1900 = vmatpush1.msk.msra.mxu0 %vm1286_vm13, %v2166_v58  ;;  %1913 = vmatprep.subr.msk.mxu1 %vm1325_vm12, %v2166_v58  ;;  %v1241_v56 = vrot.slane %v1233_v25, %v1240_v62  ;;  %vm1313_vm10 = vcmp.eq.s32.totalorder %v2874_v7, %v3171_v19  ;;  %vm1271_vm9 = vcmp.eq.s32.totalorder %v2823_v27, %v3103_v49 }
 0x1a2   : > { %1914 = vmatpush1.msk.msra.mxu1 %vm1324_vm0, %v2166_v58  ;;  %1901 = vmatprep.subr.msk.mxu0 %vm1283_vm14, %v2166_v58  ;;  %v1248_v42 = vrot.slane %v1234_v29, %v1240_v62  ;;  %vm1309_vm13 = vcmp.eq.s32.totalorder %v2871_v15, %v3171_v19  ;;  %vm1270_vm12 = vcmp.eq.s32.totalorder %v2823_v27, %v3101_v59 }
 0x1a3   : > { %1915 = vmatprep.subr.msk.mxu1 %vm1321_vm15, %v2166_v58  ;;  %1902 = vmatpush1.msk.msra.mxu0 %vm1282_vm1, %v2166_v58  ;;  %vm1308_vm0 = vcmp.eq.s32.totalorder %v2871_v15, %v3166_v32  ;;  %vm1267_vm14 = vcmp.eq.s32.totalorder %v2807_v8, %v3103_v49  ;;  %vm3239_vm15 = vcmp.lt.s32.totalorder %v848_v40, 512  ;;  %vm1305_vm1 = vcmp.eq.s32.totalorder %v2860_v4, %v3171_v19  ;;  %v315_v40 = vld [vmem:[%s3509_s1] sm:$0xff]  ;;  %s2044_s1 = sshll.u32 %s2168_s0, 4  ;;  %s2045_s1 = int_to_ptr.vmem [resolvable:$false] %s2044_s1 }
 0x1a4   : > { %1916 = vmatpush1.msk.msra.mxu1 %vm1320_vm5, %v2166_v58  ;;  %1903 = vmatprep.subr.msk.mxu0 %vm1279_vm2, %v2166_v58  ;;  %v1249_v45 = vcombine.low %v1241_v56, %v1248_v42  ;;  %vm1266_vm5 = vcmp.eq.s32.totalorder %v2807_v8, %v3101_v59  ;;  %vm1304_vm2 = vcmp.eq.s32.totalorder %v2860_v4, %v3166_v32  ;;  %v3510_v4 = vmov 0.0   ;;  %s2046_s2 = scalar_lea.vmem %s2045_s1, 128  ;;  %p2047_p4 = scmp.lt.s32.totalorder %s1657_s17, %s2045_s1 }
 0x1a5   : > { %1917 = vmatprep.subr.msk.mxu1 %vm1317_vm3, %v2166_v58  ;;  %1904 = vmatpush1.msk.msra.mxu0 %vm1278_vm6, %v2166_v58  ;;  %vm1263_vm6 = vcmp.eq.s32.totalorder %v2796_v50, %v3103_v49  ;;  %vm1301_vm3 = vcmp.eq.s32.totalorder %v2857_v60, %v3171_v19  ;;  %p2048_p5 = scmp.lt.s32.totalorder %s2046_s2, %s2040_s11 }
 0x1a6   : > { %1918 = vmatpush1.msk.msra.mxu1 %vm1316_vm7, %v2166_v58  ;;  %1905 = vmatprep.subr.msk.mxu0 %vm1275_vm4, %v2166_v58  ;;  %v1256_v15 = vrot.slane %v1249_v45, %v1240_v62  ;;  %vm1262_vm7 = vcmp.eq.s32.totalorder %v2796_v50, %v3101_v59  ;;  %vm1300_vm4 = vcmp.eq.s32.totalorder %v2857_v60, %v3166_v32 }
 0x1a7   : > { %1919 = vmatprep.subr.msk.mxu1 %vm1313_vm10, %v2166_v58  ;;  %1906 = vmatpush1.msk.msra.mxu0 %vm1274_vm11, %v2166_v58  ;;  %vm1297_vm10 = vcmp.eq.s32.totalorder %v2849_v47, %v3171_v19  ;;  %vm1296_vm11 = vcmp.eq.s32.totalorder %v2849_v47, %v3166_v32  ;;  %p2049_p6 = por %p2048_p5, %p2047_p4 }
 0x1a8   : > { %1920 = vmatpush1.msk.msra.mxu1 %vm1312_vm8, %v2166_v58  ;;  %1907 = vmatprep.subr.msk.mxu0 %vm1271_vm9, %v2166_v58  ;;  %1261 = vst.msk [vmem:[%s3264_s9] sm:$0xf] %vm3239_vm15, %v1256_v15  ;;  %vm1293_vm8 = vcmp.eq.s32.totalorder %v2846_v23, %v3171_v19  ;;  %vm1292_vm9 = vcmp.eq.s32.totalorder %v2846_v23, %v3166_v32 }
 0x1a9   : > { %1921 = vmatprep.subr.msk.mxu1 %vm1309_vm13, %v2166_v58  ;;  %1908 = vmatpush1.msk.msra.mxu0 %vm1270_vm12, %v2166_v58  ;;  %vm1289_vm13 = vcmp.eq.s32.totalorder %v2843_v21, %v3171_v19  ;;  %vm1288_vm12 = vcmp.eq.s32.totalorder %v2843_v21, %v3166_v32  ;;  %vm1281_vm15 = vcmp.eq.s32.totalorder %v2829_v30, %v3171_v19  ;;  %p2050_p7 = pnand %p2049_p6, %p2043_p3 }
 0x1aa   : > { %1922 = vmatpush1.msk.msra.mxu1 %vm1308_vm0, %v2166_v58  ;;  %1909 = vmatprep.subr.msk.mxu0 %vm1267_vm14, %v2166_v58  ;;  %vm1285_vm0 = vcmp.eq.s32.totalorder %v2840_v5, %v3171_v19  ;;  %vm1284_vm14 = vcmp.eq.s32.totalorder %v2840_v5, %v3166_v32 }
 0x1ab   : > { %1923 = vmatprep.subr.msk.mxu1 %vm1305_vm1, %v2166_v58  ;;  %1910 = vmatpush1.msk.msra.mxu0 %vm1266_vm5, %v2166_v58  ;;  %vm1280_vm1 = vcmp.eq.s32.totalorder %v2829_v30, %v3166_v32  ;;  %vm1277_vm5 = vcmp.eq.s32.totalorder %v2826_v20, %v3171_v19 }
 0x1ac   : > { %1924 = vmatpush1.msk.msra.mxu1 %vm1304_vm2, %v2166_v58  ;;  %1911 = vmatprep.subr.msk.mxu0 %vm1263_vm6, %v2166_v58  ;;  %vm1276_vm2 = vcmp.eq.s32.totalorder %v2826_v20, %v3166_v32  ;;  %vm1273_vm6 = vcmp.eq.s32.totalorder %v2823_v27, %v3171_v19 }
 0x1ad   : > { %1925 = vmatprep.subr.msk.mxu1 %vm1301_vm3, %v2166_v58  ;;  %1912 = vmatpush1.msk.msra.mxu0 %vm1262_vm7, %v2166_v58  ;;  %vm1272_vm3 = vcmp.eq.s32.totalorder %v2823_v27, %v3166_v32  ;;  %vm1269_vm7 = vcmp.eq.s32.totalorder %v2807_v8, %v3171_v19 }
 0x1ae   : > { %1926 = vmatpush1.msk.msra.mxu1 %vm1300_vm4, %v2166_v58  ;;  %1519 = vmatmul.mubr.f32.vlgmr.msra.gmra.mxu0 %v315_v40  ;;  %vm1268_vm4 = vcmp.eq.s32.totalorder %v2807_v8, %v3166_v32 }
 0x1af   : > { %1927 = vmatprep.subr.msk.mxu1 %vm1297_vm10, %v2166_v58  ;;  %1524 = vmatprep.mubr.f32.mxu0 %v3510_v4  ;;  %vm1265_vm10 = vcmp.eq.s32.totalorder %v2796_v50, %v3171_v19 }
 0x1b0   : > { %1928 = vmatpush1.msk.msra.mxu1 %vm1296_vm11, %v2166_v58  ;;  %vm1264_vm11 = vcmp.eq.s32.totalorder %v2796_v50, %v3166_v32 }
 0x1b1   : > { %1929 = vmatprep.subr.msk.mxu1 %vm1293_vm8, %v2166_v58 }
 0x1b2   : > { %1930 = vmatpush1.msk.msra.mxu1 %vm1292_vm9, %v2166_v58  ;;  %1525 = vmatmul.mubr.f32.gmra.mxu0 %v316_v28 }
 0x1b3   : > { %1931 = vmatprep.subr.msk.mxu1 %vm1289_vm13, %v2166_v58 }
 0x1b4   : > { %1932 = vmatpush1.msk.msra.mxu1 %vm1288_vm12, %v2166_v58 }
 0x1b5   : > { %1933 = vmatprep.subr.msk.mxu1 %vm1285_vm0, %v2166_v58 }
 0x1b6   : > { %1934 = vmatpush1.msk.msra.mxu1 %vm1284_vm14, %v2166_v58 }
 0x1b7   : > { %1935 = vmatprep.subr.msk.mxu1 %vm1281_vm15, %v2166_v58 }
 0x1b8   : > { %1936 = vmatpush1.msk.msra.mxu1 %vm1280_vm1, %v2166_v58 }
 0x1b9   : > { %1937 = vmatprep.subr.msk.mxu1 %vm1277_vm5, %v2166_v58 }
 0x1ba   : > { %1938 = vmatpush1.msk.msra.mxu1 %vm1276_vm2, %v2166_v58 }
 0x1bb   : > { %1939 = vmatprep.subr.msk.mxu1 %vm1273_vm6, %v2166_v58 }
 0x1bc   : > { %1940 = vmatpush1.msk.msra.mxu1 %vm1272_vm3, %v2166_v58 }
 0x1bd   : > { %1941 = vmatprep.subr.msk.mxu1 %vm1269_vm7, %v2166_v58 }
 0x1be   : > { %1942 = vmatpush1.msk.msra.mxu1 %vm1268_vm4, %v2166_v58 }
 0x1bf   : > { %1943 = vmatprep.subr.msk.mxu1 %vm1265_vm10, %v2166_v58 }
 0x1c0   : > { %1944 = vmatpush1.msk.msra.mxu1 %vm1264_vm11, %v2166_v58 }
 0x1c1   : > { %1596 = vmatmul.mubr.f32.vlgmr.msra.gmra.mxu1 %v315_v40 }
 0x1c2   : > { %1601 = vmatprep.mubr.f32.mxu1 %v3510_v4 }
 0x1c5   : > { %1602 = vmatmul.mubr.f32.gmra.mxu1 %v316_v28 }
 0x1c6   : > { %2053 = shalt.err (!%p2050_p7)
}
 0x1c7   : > { %s2054_s9 = scalar_lea.hbm %s1654_s10, 64  ;;  %s2058_s26 = scalar_lea.hbm %s3422_s5, 256 }
 0x1c8   : > { %p2055_p10 = scmp.ne.s32.totalorder %s1654_s10, %s2054_s9  ;;  %p2059_p13 = scmp.lt.s32.totalorder %s1654_s10, %s3422_s5 }
 0x1c9   : > { %p2060_p0 = scmp.lt.s32.totalorder %s2058_s26, %s2054_s9 }
 0x1ca   : > { %p2056_p11 = pnand %p2055_p10, %p2263_p8 }
 0x1cb   : > { %p2061_p1 = por %p2060_p0, %p2059_p13 }
 0x1cc   : > { %p2057_p12 = pneg %p2056_p11 }
 0x1ce   : > { %p2062_p2 = pnand %p2061_p1, %p2057_p12 }
 0x1d0   : > { %2065 = shalt.err (!%p2062_p2)
}
 0x1d1   : > { %1956 = dma.vmem_to_hbm [thread:$0]  (%p2263_p8), %s1657_s17, 64, %s1654_s10, %s1622_s13  }
 0x1d2   : > { %s3511_s0 = sshll.u32 %s2289_s6, 6  ;;  %s1948_s2 = sshll.u32 %s2150_s22, 4 }
 0x1d3   : > { %s280_s1 = scalar_lea.vmem [#allocation3], %s3511_s0  ;;  %s1634_s11 = sadd.s32 %s1948_s2, %s1947_s14 }
 0x1d4   : > { %s1637_s9 = sshll.u32 %s280_s1, 4  ;;  %s1949_s17 = sshll.u32 %s1634_s11, 7  ;;  %s3359_s9 = int_to_ptr.vmem [resolvable:$true] %s1637_s9 }
 0x1d5   : > { %s3364_s22 = scalar_lea.hbm %s3421_s4, %s1949_s17  ;;  %s1617_s21 = scalar_lea.sflag [#allocation4], %s2289_s6 }
 0x1d6   : > { %s2066_s14 = scalar_lea.vmem %s3359_s9, 1024  ;;  %s2169_s15 = smov [#allocation3]  }
 0x1d7   : > { %p2067_p3 = scmp.ne.s32.totalorder %s3359_s9, %s2066_s14  ;;  %s2070_s16 = sshll.u32 %s2169_s15, 4  ;;  %s2071_s16 = int_to_ptr.vmem [resolvable:$false] %s2070_s16 }
 0x1d8   : > { %s2072_s26 = scalar_lea.vmem %s2071_s16, 2048  ;;  %p2073_p6 = scmp.lt.s32.totalorder %s3359_s9, %s2071_s16 }
 0x1d9   : > { %p2068_p4 = pnand %p2067_p3, %p2263_p8  ;;  %p2074_p7 = scmp.lt.s32.totalorder %s2072_s26, %s2066_s14 }
 0x1db   : > { %p2069_p5 = pneg %p2068_p4  ;;  %p2075_p10 = por %p2074_p7, %p2073_p6 }
 0x1dd   : > { %p2076_p11 = pnand %p2075_p10, %p2069_p5 }
 0x26e   : > { %v1520_v50 = vpop.f32.mrf.mxu0 }
 0x26f   : > { %1608 = vst [vmem:[%s280_s1] sm:$0xff] %v1520_v50 }
 0x270   : > { %v1522_v8 = vpop.f32.mrf.mxu0 }
 0x271   : > { %1609 = vst [vmem:[%s280_s1 + $0x8] sm:$0xff] %v1522_v8 }
 0x272   : > { %v1526_v27 = vpop.f32.mrf.mxu0 }
 0x273   : > { %1612 = vst [vmem:[%s280_s1 + $0x20] sm:$0xff] %v1526_v27 }
 0x274   : > { %v1528_v20 = vpop.f32.mrf.mxu0 }
 0x275   : > { %1613 = vst [vmem:[%s280_s1 + $0x28] sm:$0xff] %v1528_v20 }
 0x281   : > { %v1597_v30 = vpop.f32.mrf.mxu1 }
 0x282   : > { %1610 = vst [vmem:[%s280_s1 + $0x10] sm:$0xff] %v1597_v30 }
 0x283   : > { %v1599_v5 = vpop.f32.mrf.mxu1 }
 0x284   : > { %1611 = vst [vmem:[%s280_s1 + $0x18] sm:$0xff] %v1599_v5 }
 0x285   : > { %v1603_v21 = vpop.f32.mrf.mxu1 }
 0x286   : > { %1614 = vst [vmem:[%s280_s1 + $0x30] sm:$0xff] %v1603_v21 }
 0x287   : > { %v1605_v23 = vpop.f32.mrf.mxu1 }
 0x288   : > { %1615 = vst [vmem:[%s280_s1 + $0x38] sm:$0xff] %v1605_v23 }
 0x289   : > { %2079 = shalt.err (!%p2076_p11)
}
 0x28a   : > { %s2080_s27 = scalar_lea.hbm %s3364_s22, 1024  ;;  %s2084_s1 = scalar_lea.hbm %s3421_s4, 4096 }
 0x28b   : > { %p2081_p12 = scmp.ne.s32.totalorder %s3364_s22, %s2080_s27  ;;  %p2085_p1 = scmp.lt.s32.totalorder %s3364_s22, %s3421_s4 }
 0x28c   : > { %p2086_p2 = scmp.lt.s32.totalorder %s2084_s1, %s2080_s27 }
 0x28d   : > { %p2082_p13 = pnand %p2081_p12, %p2263_p8 }
 0x28e   : > { %p2087_p3 = por %p2086_p2, %p2085_p1 }
 0x28f   : > { %p2083_p0 = pneg %p2082_p13 }
 0x291   : > { %p2088_p4 = pnand %p2087_p3, %p2083_p0 }
 0x293   : > { %2091 = shalt.err (!%p2088_p4)
}
 0x294   : > { %s2170_s17 = smov 512   ;;  %s2171_s10 = smov 1024  }
 0x295   : > { %s2172_s13 = smov 32  }
 0x296   : > { %1955 = dma.vmem_to_hbm [thread:$0]  (%p2263_p8), %s3359_s9, 1024, %s3364_s22, %s1617_s21, %s2170_s17, %s2171_s10, %s2172_s13  }
 0x297 PF: > { %p1966_p5 = scmp.ge.s32.totalorder %s2162_s25, 2  ;;  %s1668_s14 = sand.u32 1, %s2134_s18  }
 0x298   : > { %s1669_s15 = scalar_lea.sflag [#allocation4], %s1668_s14 }
 0x299   : > { %p1960_p6 = pnand %p1966_p5, %p2267_p9 }
 0x29b   : > { %p1961_p7 = pneg %p1960_p6 }
 0x29d   : > { %2125 = dma.done.wait (%p1961_p7), %s1669_s15, 1024  }
 0x29e   : > { %2127 = vsyncadd (%p1961_p7), %s1669_s15, 4294966272  ;;  %s1678_s16 = scalar_lea.sflag [#allocation6], %s1668_s14 }
 0x29f   : > { %2129 = dma.done.wait (%p1961_p7), %s1678_s16, 64  }
 0x2a0   : > { %2131 = vsyncadd (%p1961_p7), %s1678_s16, 4294967232  ;;  %s22_s25 = sadd.s32 1, %s2162_s25   ;;  %s3512_s18 = smov %s2138_s19 }
 0x2a1   : > { %p19_p10 = scmp.ge.s32.totalorder %s22_s25, 6   ;;  %s3513_s19 = smov %s2142_s20 }
 0x2a2   : > { %s3514_s20 = smov %s2275_s12  ;;  %s3515_s21 = smov %s2154_s23 }
 0x2a3   : > { %s3516_s22 = smov %s2158_s24  ;;  %s3517_s23 = smov %s3520_s28 }
 0x2a4   : > { %s3518_s24 = smov %s3524_s29  ;;  %21 = sbr.rel (!%p19_p10) target bundleno = 11 (0xb), region = 116 }
 0x2a9   :  { %1683 = vsyncpa [#allocation4], 1 }
 0x2aa   :  { %1685 = vsyncpa [#allocation4 + $0x1], 1 }
 0x2ab   :  { %1686 = vsyncpa [#allocation6], 1 }
 0x2ac   :  { %1688 = vsyncpa [#allocation6 + $0x1], 1 }

</bundles_post_ra>
